<compile_context>
chip_gen: v7x
topology: tpu7x:2x2x1
jax: 0.10.0
libtpu: 0.0.40
codegen_flags: <defaults>
</compile_context>

<pallas_src>
import jax
import jax.numpy as jnp
from jax.experimental import pallas as pl
from jax.experimental.pallas import tpu as pltpu

_EPS = 1e-5


# ------------------------------ kernels ------------------------------------ #

def _conv3x3_bn_stats(h, w_ref, b_ref, y_ref, mean_ref, m2_ref,
                      pad_ref, patch_ref):
    """3x3 SAME conv (single im2col MXU matmul) + bias on one image block.

    Writes the pre-BN activations and centered per-block BatchNorm partial
    statistics (block mean, block sum of squared deviations).
    h:         (Hh, Wh, Cin) f32 activations for this block
    w_ref:     (9*Cin, Cout) bf16 im2col-flattened weights
    b_ref:     (1, Cout)     f32 bias
    y_ref:     (1, Hh*Wh, Cout) f32 pre-BN output
    mean_ref:  (1, 1, Cout)  per-block mean
    m2_ref:    (1, 1, Cout)  per-block sum of squared deviations
    pad_ref:   (Hh+2, Wh+2, Cin) VMEM halo scratch
    patch_ref: (Hh, Wh, 9*Cin)   VMEM im2col scratch
    """
    Hh, Wh, cin = h.shape
    M = Hh * Wh

    # padding=1 handled entirely in VMEM (no jnp.pad / extra HBM traffic).
    pad_ref[...] = jnp.zeros_like(pad_ref)
    pad_ref[1:Hh + 1, 1:Wh + 1, :] = h

    # im2col: lay the 9 shifted taps side by side on the lane (channel) axis.
    for ky in range(3):
        for kx in range(3):
            t0 = (ky * 3 + kx) * cin
            patch_ref[:, :, t0:t0 + cin] = pad_ref[ky:ky + Hh, kx:kx + Wh, :]

    # One MXU matmul with K = 9*Cin (instead of 9 matmuls with K = Cin).
    # bf16 operands, f32 accumulation (per v6e/v7x MXU guidance).
    patches = patch_ref[...].reshape(M, 9 * cin).astype(jnp.bfloat16)
    acc = jnp.dot(patches, w_ref[...],
                  preferred_element_type=jnp.float32) + b_ref[...]
    y_ref[0] = acc

    # Centered per-block BN partial stats (numerically stable; combined on host
    # with the exact parallel-variance formula so batch stats stay global).
    mean_b = jnp.sum(acc, axis=0, keepdims=True) * (1.0 / M)      # (1, Cout)
    m2_b = jnp.sum(jnp.square(acc - mean_b), axis=0, keepdims=True)
    mean_ref[0] = mean_b
    m2_ref[0] = m2_b


def _pool_conv_kernel(x_ref, w_ref, b_ref, y_ref, mean_ref, m2_ref,
                      pad_ref, patch_ref):
    """Fused MaxPool2d(2) + conv1 + bias (+ BN partial stats) for one image.

    x_ref: (1, Hh, 2, Wh, 2*Cin) -- a free reshape of one NHWC image; the 2x2
    max-pool is two maximums over contiguous slices (no strided gathers).
    """
    cin = x_ref.shape[-1] // 2
    v = x_ref[0]                                   # (Hh, 2, Wh, 2*Cin)
    a = jnp.maximum(v[:, 0], v[:, 1])              # pool over the H pair
    pooled = jnp.maximum(a[:, :, :cin], a[:, :, cin:])   # pool over the W pair
    _conv3x3_bn_stats(pooled, w_ref, b_ref, y_ref, mean_ref, m2_ref,
                      pad_ref, patch_ref)


def _bn_relu_conv_kernel(h_ref, scale_ref, shift_ref, w_ref, b_ref,
                         y_ref, mean_ref, m2_ref, pad_ref, patch_ref):
    """Fused BN1 (global batch stats) + ReLU + conv2 + bias (+ BN2 partials)."""
    h = jnp.maximum(h_ref[0] * scale_ref[...] + shift_ref[...], 0.0)
    _conv3x3_bn_stats(h, w_ref, b_ref, y_ref, mean_ref, m2_ref,
                      pad_ref, patch_ref)


def _bn_relu_kernel(y_ref, scale_ref, shift_ref, o_ref):
    """Tiled BN2 + ReLU epilogue."""
    o_ref[0] = jnp.maximum(y_ref[0] * scale_ref[...] + shift_ref[...], 0.0)


# ------------------------------ wrapper ------------------------------------ #

def _bn_scale_shift(mean_p, m2_p, m_per_block, gamma, beta):
    """Combine per-block centered stats into global BN scale/shift.

    Exact parallel-variance (Chan) combine; biased variance like BatchNorm2d
    in training mode.  This cross-block reduction is O(N*C) scalars of host
    glue and keeps the Pallas grid axis fully 'parallel'.
    """
    nb = mean_p.shape[0]
    mu_b = mean_p[:, 0, :]                                     # (B, C)
    mean = jnp.mean(mu_b, axis=0)                              # (C,)
    m2 = (jnp.sum(m2_p[:, 0, :], axis=0)
          + m_per_block * jnp.sum(jnp.square(mu_b - mean), axis=0))
    var = m2 / (nb * m_per_block)
    scale = gamma * jax.lax.rsqrt(var + _EPS)
    shift = beta - mean * scale
    return scale.reshape(1, -1), shift.reshape(1, -1)


def down_forward(x_nchw, p):
    """Down(in_ch, out_ch).forward, NCHW in / NCHW out (training-mode BN)."""
    N, Cin, H, W = x_nchw.shape
    # MaxPool2d(2) floors odd spatial dims.
    H, W = (H // 2) * 2, (W // 2) * 2
    x_nchw = x_nchw[:, :, :H, :W]
    Hh, Wh = H // 2, W // 2
    M = Hh * Wh
    Cmid = p["w1"].shape[-1]
    Cout = p["w2"].shape[-1]

    cparams = pltpu.CompilerParams(
        dimension_semantics=("parallel",),       # shard batch grid across TCs (v7x)
        vmem_limit_bytes=32 * 1024 * 1024,       # explicit budget; fits v7x 64 MiB
    )

    # One-time NCHW -> NHWC layout change, plus a *free* reshape exposing the
    # 2x2 pooling pairs so the kernel can pool with contiguous slices.
    x = jnp.transpose(x_nchw, (0, 2, 3, 1)).reshape(N, Hh, 2, Wh, 2 * Cin)

    # im2col-flattened weights, bf16 for the MXU; biases stay f32.
    w1 = p["w1"].reshape(9 * Cin, Cmid).astype(jnp.bfloat16)
    w2 = p["w2"].reshape(9 * Cmid, Cout).astype(jnp.bfloat16)
    b1 = p["b1"].reshape(1, Cmid).astype(jnp.float32)
    b2 = p["b2"].reshape(1, Cout).astype(jnp.float32)

    # ---- stage 1: fused maxpool + conv1 + bias, per-image BN partial stats --
    y1, mean1, m21 = pl.pallas_call(
        _pool_conv_kernel,
        grid=(N,),
        in_specs=[
            pl.BlockSpec((1, Hh, 2, Wh, 2 * Cin), lambda n: (n, 0, 0, 0, 0)),
            pl.BlockSpec((9 * Cin, Cmid), lambda n: (0, 0)),
            pl.BlockSpec((1, Cmid), lambda n: (0, 0)),
        ],
        out_specs=[
            pl.BlockSpec((1, M, Cmid), lambda n: (n, 0, 0)),
            pl.BlockSpec((1, 1, Cmid), lambda n: (n, 0, 0)),
            pl.BlockSpec((1, 1, Cmid), lambda n: (n, 0, 0)),
        ],
        out_shape=(
            jax.ShapeDtypeStruct((N, M, Cmid), jnp.float32),
            jax.ShapeDtypeStruct((N, 1, Cmid), jnp.float32),
            jax.ShapeDtypeStruct((N, 1, Cmid), jnp.float32),
        ),
        scratch_shapes=[
            pltpu.VMEM((Hh + 2, Wh + 2, Cin), jnp.float32),
            pltpu.VMEM((Hh, Wh, 9 * Cin), jnp.float32),
        ],
        compiler_params=cparams,
    )(x, w1, b1)
    scale1, shift1 = _bn_scale_shift(mean1, m21, M, p["g1"], p["beta1"])

    # ---- stage 2: BN1 + ReLU (on the fly) + conv2 + bias, BN2 partial stats -
    y2, mean2, m22 = pl.pallas_call(
        _bn_relu_conv_kernel,
        grid=(N,),
        in_specs=[
            pl.BlockSpec((1, Hh, Wh, Cmid), lambda n: (n, 0, 0, 0)),
            pl.BlockSpec((1, Cmid), lambda n: (0, 0)),
            pl.BlockSpec((1, Cmid), lambda n: (0, 0)),
            pl.BlockSpec((9 * Cmid, Cout), lambda n: (0, 0)),
            pl.BlockSpec((1, Cout), lambda n: (0, 0)),
        ],
        out_specs=[
            pl.BlockSpec((1, M, Cout), lambda n: (n, 0, 0)),
            pl.BlockSpec((1, 1, Cout), lambda n: (n, 0, 0)),
            pl.BlockSpec((1, 1, Cout), lambda n: (n, 0, 0)),
        ],
        out_shape=(
            jax.ShapeDtypeStruct((N, M, Cout), jnp.float32),
            jax.ShapeDtypeStruct((N, 1, Cout), jnp.float32),
            jax.ShapeDtypeStruct((N, 1, Cout), jnp.float32),
        ),
        scratch_shapes=[
            pltpu.VMEM((Hh + 2, Wh + 2, Cmid), jnp.float32),
            pltpu.VMEM((Hh, Wh, 9 * Cmid), jnp.float32),
        ],
        compiler_params=cparams,
    )(y1.reshape(N, Hh, Wh, Cmid), scale1, shift1, w2, b2)
    scale2, shift2 = _bn_scale_shift(mean2, m22, M, p["g2"], p["beta2"])

    # ---- stage 3: BN2 + ReLU epilogue ---------------------------------------
    out = pl.pallas_call(
        _bn_relu_kernel,
        grid=(N,),
        in_specs=[
            pl.BlockSpec((1, M, Cout), lambda n: (n, 0, 0)),
            pl.BlockSpec((1, Cout), lambda n: (0, 0)),
            pl.BlockSpec((1, Cout), lambda n: (0, 0)),
        ],
        out_specs=pl.BlockSpec((1, M, Cout), lambda n: (n, 0, 0)),
        out_shape=jax.ShapeDtypeStruct((N, M, Cout), jnp.float32),
        compiler_params=cparams,
    )(y2, scale2, shift2)

    out = out.reshape(N, Hh, Wh, Cout)
    return jnp.transpose(out, (0, 3, 1, 2))                  # NHWC -> NCHW


# --------------------------- pure-JAX reference ----------------------------- #
# Mirrors the kernel's precision policy (bf16 MXU operands, f32 accumulation,
# all BN/ReLU math in f32) so the comparison is apples-to-apples.

def _ref_down(x_nchw, p):
    def cbr(x, w, b, g, be):
        y = jax.lax.conv_general_dilated(
            x.astype(jnp.bfloat16), w.astype(jnp.bfloat16), (1, 1), "SAME",
            dimension_numbers=("NCHW", "HWIO", "NCHW"),
            preferred_element_type=jnp.float32)
        y = y + b[None, :, None, None]
        mean = y.mean(axis=(0, 2, 3), keepdims=True)
        var = jnp.square(y - mean).mean(axis=(0, 2, 3), keepdims=True)
        y = ((y - mean) * jax.lax.rsqrt(var + _EPS) * g[None, :, None, None]
             + be[None, :, None, None])
        return jnp.maximum(y, 0.0)

    N, C, H, W = x_nchw.shape
    x = x_nchw.reshape(N, C, H // 2, 2, W // 2, 2).max(axis=(3, 5))
    x = cbr(x, p["w1"], p["b1"], p["g1"], p["beta1"])
    x = cbr(x, p["w2"], p["b2"], p["g2"], p["beta2"])
    return x


# --------------------------------- main ------------------------------------ #

if __name__ == "__main__":
    key = jax.random.PRNGKey(0)
    ks = jax.random.split(key, 10)

    Cin, Cout = 4, 8
    params = {
        "w1": 0.1 * jax.random.normal(ks[0], (3, 3, Cin, Cout), jnp.float32),
        "b1": 0.01 * jax.random.normal(ks[1], (Cout,), jnp.float32),
        "g1": 1.0 + 0.1 * jax.random.normal(ks[2], (Cout,), jnp.float32),
        "beta1": 0.1 * jax.random.normal(ks[3], (Cout,), jnp.float32),
        "w2": 0.1 * jax.random.normal(ks[4], (3, 3, Cout, Cout), jnp.float32),
        "b2": 0.01 * jax.random.normal(ks[5], (Cout,), jnp.float32),
        "g2": 1.0 + 0.1 * jax.random.normal(ks[6], (Cout,), jnp.float32),
        "beta2": 0.1 * jax.random.normal(ks[7], (Cout,), jnp.float32),
    }

    x = jax.random.normal(ks[8], (2, Cin, 16, 16), jnp.float32)   # NCHW

    fwd = jax.jit(down_forward)
    out = jax.block_until_ready(fwd(x, params))
    ref = jax.block_until_ready(_ref_down(x, params))

    assert out.shape == (2, Cout, 8, 8), out.shape
    max_err = float(jnp.max(jnp.abs(out - ref)))
    # bf16 MXU operands / f32 accumulation on both sides -> residual error is
    # only summation-order + stat-combine noise.
    assert max_err < 5e-3, max_err

    print("KERNEL_OK")
</pallas_src>

<mosaic_0001>
module attributes {stable_mosaic.version = 11 : i64} {
  func.func @_bn_relu_kernel(%arg0: i32, %arg1: memref<1x64x8xf32, #tpu.memory_space<vmem>>, %arg2: memref<1x8xf32, #tpu.memory_space<vmem>>, %arg3: memref<1x8xf32, #tpu.memory_space<vmem>>, %arg4: memref<1x64x8xf32, #tpu.memory_space<vmem>>) attributes {dimension_semantics = [#tpu.dimension_semantics<parallel>], iteration_bounds = array<i64: 2>, scalar_prefetch = 0 : i64, scratch_operands = 0 : i64, tpu.core_type = #tpu.core_type<tc>, window_params = [{transform_indices = @transform_0, window_bounds = array<i64: 1, 64, 8>}, {pipeline_mode = #tpu.pipeline_mode<synchronous>, transform_indices = @transform_1, window_bounds = array<i64: 1, 8>}, {pipeline_mode = #tpu.pipeline_mode<synchronous>, transform_indices = @transform_2, window_bounds = array<i64: 1, 8>}, {transform_indices = @transform_3, window_bounds = array<i64: 1, 64, 8>}]} {
    %c0 = arith.constant 0 : index
    %c0_0 = arith.constant 0 : index
    %c0_1 = arith.constant 0 : index
    %0 = vector.load %arg1[%c0, %c0_0, %c0_1] : memref<1x64x8xf32, #tpu.memory_space<vmem>>, vector<1x64x8xf32>
    %1 = vector.shape_cast %0 : vector<1x64x8xf32> to vector<64x8xf32>
    %c0_2 = arith.constant 0 : index
    %c0_3 = arith.constant 0 : index
    %2 = vector.load %arg2[%c0_2, %c0_3] : memref<1x8xf32, #tpu.memory_space<vmem>>, vector<1x8xf32>
    %3 = vector.broadcast %2 : vector<1x8xf32> to vector<64x8xf32>
    %4 = arith.mulf %1, %3 : vector<64x8xf32>
    %c0_4 = arith.constant 0 : index
    %c0_5 = arith.constant 0 : index
    %5 = vector.load %arg3[%c0_4, %c0_5] : memref<1x8xf32, #tpu.memory_space<vmem>>, vector<1x8xf32>
    %6 = vector.broadcast %5 : vector<1x8xf32> to vector<64x8xf32>
    %7 = arith.addf %4, %6 : vector<64x8xf32>
    %cst = arith.constant 0.000000e+00 : f32
    %8 = vector.broadcast %cst : f32 to vector<64x8xf32>
    %9 = arith.maximumf %7, %8 : vector<64x8xf32>
    %c0_6 = arith.constant 0 : index
    %c0_7 = arith.constant 0 : index
    %c0_8 = arith.constant 0 : index
    %10 = vector.load %arg4[%c0_6, %c0_7, %c0_8] : memref<1x64x8xf32, #tpu.memory_space<vmem>>, vector<1x64x8xf32>
    %11 = vector.shape_cast %10 : vector<1x64x8xf32> to vector<64x8xf32>
    %12 = vector.shape_cast %9 : vector<64x8xf32> to vector<1x64x8xf32>
    tpu.vector_store %arg4[%c0_6, %c0_7, %c0_8], %12 {strides = array<i32>} : memref<1x64x8xf32, #tpu.memory_space<vmem>>, vector<1x64x8xf32>,
    return
  }
  func.func @transform_0(%arg0: i32) -> (i32, i32, i32) {
    %c0_i32 = arith.constant 0 : i32
    %c0_i32_0 = arith.constant 0 : i32
    %c0_i32_1 = arith.constant 0 : i32
    return %arg0, %c0_i32, %c0_i32_0 : i32, i32, i32
  }
  func.func @transform_1(%arg0: i32) -> (i32, i32) {
    %c0_i32 = arith.constant 0 : i32
    %c0_i32_0 = arith.constant 0 : i32
    %c0_i32_1 = arith.constant 0 : i32
    return %c0_i32, %c0_i32_0 : i32, i32
  }
  func.func @transform_2(%arg0: i32) -> (i32, i32) {
    %c0_i32 = arith.constant 0 : i32
    %c0_i32_0 = arith.constant 0 : i32
    %c0_i32_1 = arith.constant 0 : i32
    return %c0_i32, %c0_i32_0 : i32, i32
  }
  func.func @transform_3(%arg0: i32) -> (i32, i32, i32) {
    %c0_i32 = arith.constant 0 : i32
    %c0_i32_0 = arith.constant 0 : i32
    %c0_i32_1 = arith.constant 0 : i32
    return %arg0, %c0_i32, %c0_i32_0 : i32, i32, i32
  }
}

module attributes {stable_mosaic.version = 11 : i64} {
  func.func @_bn_relu_conv_kernel(%arg0: i32, %arg1: memref<1x8x8x8xf32, #tpu.memory_space<vmem>>, %arg2: memref<1x8xf32, #tpu.memory_space<vmem>>, %arg3: memref<1x8xf32, #tpu.memory_space<vmem>>, %arg4: memref<72x8xbf16, #tpu.memory_space<vmem>>, %arg5: memref<1x8xf32, #tpu.memory_space<vmem>>, %arg6: memref<1x64x8xf32, #tpu.memory_space<vmem>>, %arg7: memref<1x1x8xf32, #tpu.memory_space<vmem>>, %arg8: memref<1x1x8xf32, #tpu.memory_space<vmem>>, %arg9: memref<10x10x8xf32, #tpu.memory_space<vmem>>, %arg10: memref<8x8x72xf32, #tpu.memory_space<vmem>>) attributes {dimension_semantics = [#tpu.dimension_semantics<parallel>], iteration_bounds = array<i64: 2>, scalar_prefetch = 0 : i64, scratch_operands = 2 : i64, tpu.core_type = #tpu.core_type<tc>, window_params = [{transform_indices = @transform_0, window_bounds = array<i64: 1, 8, 8, 8>}, {pipeline_mode = #tpu.pipeline_mode<synchronous>, transform_indices = @transform_1, window_bounds = array<i64: 1, 8>}, {pipeline_mode = #tpu.pipeline_mode<synchronous>, transform_indices = @transform_2, window_bounds = array<i64: 1, 8>}, {pipeline_mode = #tpu.pipeline_mode<synchronous>, transform_indices = @transform_3, window_bounds = array<i64: 72, 8>}, {pipeline_mode = #tpu.pipeline_mode<synchronous>, transform_indices = @transform_4, window_bounds = array<i64: 1, 8>}, {transform_indices = @transform_5, window_bounds = array<i64: 1, 64, 8>}, {transform_indices = @transform_6, window_bounds = array<i64: 1, 1, 8>}, {transform_indices = @transform_7, window_bounds = array<i64: 1, 1, 8>}]} {
    %c0 = arith.constant 0 : index
    %c0_0 = arith.constant 0 : index
    %c0_1 = arith.constant 0 : index
    %c0_2 = arith.constant 0 : index
    %0 = vector.load %arg1[%c0, %c0_0, %c0_1, %c0_2] : memref<1x8x8x8xf32, #tpu.memory_space<vmem>>, vector<1x8x8x8xf32>
    %1 = vector.shape_cast %0 : vector<1x8x8x8xf32> to vector<8x8x8xf32>
    %c0_3 = arith.constant 0 : index
    %c0_4 = arith.constant 0 : index
    %2 = vector.load %arg2[%c0_3, %c0_4] : memref<1x8xf32, #tpu.memory_space<vmem>>, vector<1x8xf32>
    %3 = vector.shape_cast %2 : vector<1x8xf32> to vector<1x1x8xf32>
    %4 = vector.broadcast %3 : vector<1x1x8xf32> to vector<8x8x8xf32>
    %5 = arith.mulf %1, %4 : vector<8x8x8xf32>
    %c0_5 = arith.constant 0 : index
    %c0_6 = arith.constant 0 : index
    %6 = vector.load %arg3[%c0_5, %c0_6] : memref<1x8xf32, #tpu.memory_space<vmem>>, vector<1x8xf32>
    %7 = vector.shape_cast %6 : vector<1x8xf32> to vector<1x1x8xf32>
    %8 = vector.broadcast %7 : vector<1x1x8xf32> to vector<8x8x8xf32>
    %9 = arith.addf %5, %8 : vector<8x8x8xf32>
    %cst = arith.constant 0.000000e+00 : f32
    %10 = vector.broadcast %cst : f32 to vector<8x8x8xf32>
    %11 = arith.maximumf %9, %10 : vector<8x8x8xf32>
    %cst_7 = arith.constant 0.000000e+00 : f32
    %12 = vector.broadcast %cst_7 : f32 to vector<10x10x8xf32>
    %c0_8 = arith.constant 0 : index
    %c0_9 = arith.constant 0 : index
    %c0_10 = arith.constant 0 : index
    %13 = vector.load %arg9[%c0_8, %c0_9, %c0_10] : memref<10x10x8xf32, #tpu.memory_space<vmem>>, vector<10x10x8xf32>
    tpu.vector_store %arg9[%c0_8, %c0_9, %c0_10], %12 {strides = array<i32>} : memref<10x10x8xf32, #tpu.memory_space<vmem>>, vector<10x10x8xf32>,
    %c1 = arith.constant 1 : index
    %c1_11 = arith.constant 1 : index
    %c0_12 = arith.constant 0 : index
    %14 = vector.load %arg9[%c1, %c1_11, %c0_12] : memref<10x10x8xf32, #tpu.memory_space<vmem>>, vector<8x8x8xf32>
    tpu.vector_store %arg9[%c1, %c1_11, %c0_12], %11 {strides = array<i32>} : memref<10x10x8xf32, #tpu.memory_space<vmem>>, vector<8x8x8xf32>,
    %c0_13 = arith.constant 0 : index
    %c0_14 = arith.constant 0 : index
    %c0_15 = arith.constant 0 : index
    %15 = vector.load %arg9[%c0_13, %c0_14, %c0_15] : memref<10x10x8xf32, #tpu.memory_space<vmem>>, vector<8x8x8xf32>
    %c0_16 = arith.constant 0 : index
    %c0_17 = arith.constant 0 : index
    %c0_18 = arith.constant 0 : index
    %16 = vector.load %arg10[%c0_16, %c0_17, %c0_18] : memref<8x8x72xf32, #tpu.memory_space<vmem>>, vector<8x8x8xf32>
    tpu.vector_store %arg10[%c0_16, %c0_17, %c0_18], %15 {strides = array<i32>} : memref<8x8x72xf32, #tpu.memory_space<vmem>>, vector<8x8x8xf32>,
    %c0_19 = arith.constant 0 : index
    %c1_20 = arith.constant 1 : index
    %c0_21 = arith.constant 0 : index
    %17 = vector.load %arg9[%c0_19, %c1_20, %c0_21] : memref<10x10x8xf32, #tpu.memory_space<vmem>>, vector<8x8x8xf32>
    %c0_22 = arith.constant 0 : index
    %c0_23 = arith.constant 0 : index
    %c8 = arith.constant 8 : index
    %18 = vector.load %arg10[%c0_22, %c0_23, %c8] : memref<8x8x72xf32, #tpu.memory_space<vmem>>, vector<8x8x8xf32>
    tpu.vector_store %arg10[%c0_22, %c0_23, %c8], %17 {strides = array<i32>} : memref<8x8x72xf32, #tpu.memory_space<vmem>>, vector<8x8x8xf32>,
    %c0_24 = arith.constant 0 : index
    %c2 = arith.constant 2 : index
    %c0_25 = arith.constant 0 : index
    %19 = vector.load %arg9[%c0_24, %c2, %c0_25] : memref<10x10x8xf32, #tpu.memory_space<vmem>>, vector<8x8x8xf32>
    %c0_26 = arith.constant 0 : index
    %c0_27 = arith.constant 0 : index
    %c16 = arith.constant 16 : index
    %20 = vector.load %arg10[%c0_26, %c0_27, %c16] : memref<8x8x72xf32, #tpu.memory_space<vmem>>, vector<8x8x8xf32>
    tpu.vector_store %arg10[%c0_26, %c0_27, %c16], %19 {strides = array<i32>} : memref<8x8x72xf32, #tpu.memory_space<vmem>>, vector<8x8x8xf32>,
    %c1_28 = arith.constant 1 : index
    %c0_29 = arith.constant 0 : index
    %c0_30 = arith.constant 0 : index
    %21 = vector.load %arg9[%c1_28, %c0_29, %c0_30] : memref<10x10x8xf32, #tpu.memory_space<vmem>>, vector<8x8x8xf32>
    %c0_31 = arith.constant 0 : index
    %c0_32 = arith.constant 0 : index
    %c24 = arith.constant 24 : index
    %22 = vector.load %arg10[%c0_31, %c0_32, %c24] : memref<8x8x72xf32, #tpu.memory_space<vmem>>, vector<8x8x8xf32>
    tpu.vector_store %arg10[%c0_31, %c0_32, %c24], %21 {strides = array<i32>} : memref<8x8x72xf32, #tpu.memory_space<vmem>>, vector<8x8x8xf32>,
    %c1_33 = arith.constant 1 : index
    %c1_34 = arith.constant 1 : index
    %c0_35 = arith.constant 0 : index
    %23 = vector.load %arg9[%c1_33, %c1_34, %c0_35] : memref<10x10x8xf32, #tpu.memory_space<vmem>>, vector<8x8x8xf32>
    %c0_36 = arith.constant 0 : index
    %c0_37 = arith.constant 0 : index
    %c32 = arith.constant 32 : index
    %24 = vector.load %arg10[%c0_36, %c0_37, %c32] : memref<8x8x72xf32, #tpu.memory_space<vmem>>, vector<8x8x8xf32>
    tpu.vector_store %arg10[%c0_36, %c0_37, %c32], %23 {strides = array<i32>} : memref<8x8x72xf32, #tpu.memory_space<vmem>>, vector<8x8x8xf32>,
    %c1_38 = arith.constant 1 : index
    %c2_39 = arith.constant 2 : index
    %c0_40 = arith.constant 0 : index
    %25 = vector.load %arg9[%c1_38, %c2_39, %c0_40] : memref<10x10x8xf32, #tpu.memory_space<vmem>>, vector<8x8x8xf32>
    %c0_41 = arith.constant 0 : index
    %c0_42 = arith.constant 0 : index
    %c40 = arith.constant 40 : index
    %26 = vector.load %arg10[%c0_41, %c0_42, %c40] : memref<8x8x72xf32, #tpu.memory_space<vmem>>, vector<8x8x8xf32>
    tpu.vector_store %arg10[%c0_41, %c0_42, %c40], %25 {strides = array<i32>} : memref<8x8x72xf32, #tpu.memory_space<vmem>>, vector<8x8x8xf32>,
    %c2_43 = arith.constant 2 : index
    %c0_44 = arith.constant 0 : index
    %c0_45 = arith.constant 0 : index
    %27 = vector.load %arg9[%c2_43, %c0_44, %c0_45] : memref<10x10x8xf32, #tpu.memory_space<vmem>>, vector<8x8x8xf32>
    %c0_46 = arith.constant 0 : index
    %c0_47 = arith.constant 0 : index
    %c48 = arith.constant 48 : index
    %28 = vector.load %arg10[%c0_46, %c0_47, %c48] : memref<8x8x72xf32, #tpu.memory_space<vmem>>, vector<8x8x8xf32>
    tpu.vector_store %arg10[%c0_46, %c0_47, %c48], %27 {strides = array<i32>} : memref<8x8x72xf32, #tpu.memory_space<vmem>>, vector<8x8x8xf32>,
    %c2_48 = arith.constant 2 : index
    %c1_49 = arith.constant 1 : index
    %c0_50 = arith.constant 0 : index
    %29 = vector.load %arg9[%c2_48, %c1_49, %c0_50] : memref<10x10x8xf32, #tpu.memory_space<vmem>>, vector<8x8x8xf32>
    %c0_51 = arith.constant 0 : index
    %c0_52 = arith.constant 0 : index
    %c56 = arith.constant 56 : index
    %30 = vector.load %arg10[%c0_51, %c0_52, %c56] : memref<8x8x72xf32, #tpu.memory_space<vmem>>, vector<8x8x8xf32>
    tpu.vector_store %arg10[%c0_51, %c0_52, %c56], %29 {strides = array<i32>} : memref<8x8x72xf32, #tpu.memory_space<vmem>>, vector<8x8x8xf32>,
    %c2_53 = arith.constant 2 : index
    %c2_54 = arith.constant 2 : index
    %c0_55 = arith.constant 0 : index
    %31 = vector.load %arg9[%c2_53, %c2_54, %c0_55] : memref<10x10x8xf32, #tpu.memory_space<vmem>>, vector<8x8x8xf32>
    %c0_56 = arith.constant 0 : index
    %c0_57 = arith.constant 0 : index
    %c64 = arith.constant 64 : index
    %32 = vector.load %arg10[%c0_56, %c0_57, %c64] : memref<8x8x72xf32, #tpu.memory_space<vmem>>, vector<8x8x8xf32>
    tpu.vector_store %arg10[%c0_56, %c0_57, %c64], %31 {strides = array<i32>} : memref<8x8x72xf32, #tpu.memory_space<vmem>>, vector<8x8x8xf32>,
    %c0_58 = arith.constant 0 : index
    %c0_59 = arith.constant 0 : index
    %c0_60 = arith.constant 0 : index
    %33 = vector.load %arg10[%c0_58, %c0_59, %c0_60] : memref<8x8x72xf32, #tpu.memory_space<vmem>>, vector<8x8x72xf32>
    %34 = vector.shape_cast %33 : vector<8x8x72xf32> to vector<64x72xf32>
    %35 = arith.truncf %34 : vector<64x72xf32> to vector<64x72xbf16>
    %c0_61 = arith.constant 0 : index
    %c0_62 = arith.constant 0 : index
    %36 = vector.load %arg4[%c0_61, %c0_62] : memref<72x8xbf16, #tpu.memory_space<vmem>>, vector<72x8xbf16>
    %cst_63 = arith.constant dense<0.000000e+00> : vector<64x8xf32>
    %37 = tpu.matmul %35, %36, %cst_63 {dimension_numbers = #tpu.dot_dimension_numbers<[1], [0], [0], [1], [0, 0, 1, 1], [], []>} : vector<64x72xbf16>, vector<72x8xbf16>, vector<64x8xf32> -> vector<64x8xf32>
    %c0_64 = arith.constant 0 : index
    %c0_65 = arith.constant 0 : index
    %38 = vector.load %arg5[%c0_64, %c0_65] : memref<1x8xf32, #tpu.memory_space<vmem>>, vector<1x8xf32>
    %39 = vector.broadcast %38 : vector<1x8xf32> to vector<64x8xf32>
    %40 = arith.addf %37, %39 : vector<64x8xf32>
    %c0_66 = arith.constant 0 : index
    %c0_67 = arith.constant 0 : index
    %c0_68 = arith.constant 0 : index
    %41 = vector.load %arg6[%c0_66, %c0_67, %c0_68] : memref<1x64x8xf32, #tpu.memory_space<vmem>>, vector<1x64x8xf32>
    %42 = vector.shape_cast %41 : vector<1x64x8xf32> to vector<64x8xf32>
    %43 = vector.shape_cast %40 : vector<64x8xf32> to vector<1x64x8xf32>
    tpu.vector_store %arg6[%c0_66, %c0_67, %c0_68], %43 {strides = array<i32>} : memref<1x64x8xf32, #tpu.memory_space<vmem>>, vector<1x64x8xf32>,
    %cst_69 = arith.constant dense<0.000000e+00> : vector<8xf32>
    %44 = vector.multi_reduction <add>, %40, %cst_69 [0] : vector<64x8xf32> to vector<8xf32>
    %45 = vector.shape_cast %44 : vector<8xf32> to vector<1x8xf32>
    %cst_70 = arith.constant 1.562500e-02 : f32
    %46 = vector.broadcast %cst_70 : f32 to vector<1x8xf32>
    %47 = arith.mulf %45, %46 : vector<1x8xf32>
    %48 = vector.broadcast %47 : vector<1x8xf32> to vector<64x8xf32>
    %49 = arith.subf %40, %48 : vector<64x8xf32>
    %50 = arith.mulf %49, %49 : vector<64x8xf32>
    %cst_71 = arith.constant dense<0.000000e+00> : vector<8xf32>
    %51 = vector.multi_reduction <add>, %50, %cst_71 [0] : vector<64x8xf32> to vector<8xf32>
    %52 = vector.shape_cast %51 : vector<8xf32> to vector<1x8xf32>
    %c0_72 = arith.constant 0 : index
    %c0_73 = arith.constant 0 : index
    %c0_74 = arith.constant 0 : index
    %53 = vector.load %arg7[%c0_72, %c0_73, %c0_74] : memref<1x1x8xf32, #tpu.memory_space<vmem>>, vector<1x1x8xf32>
    %54 = vector.shape_cast %53 : vector<1x1x8xf32> to vector<1x8xf32>
    %55 = vector.shape_cast %47 : vector<1x8xf32> to vector<1x1x8xf32>
    tpu.vector_store %arg7[%c0_72, %c0_73, %c0_74], %55 {strides = array<i32>} : memref<1x1x8xf32, #tpu.memory_space<vmem>>, vector<1x1x8xf32>,
    %c0_75 = arith.constant 0 : index
    %c0_76 = arith.constant 0 : index
    %c0_77 = arith.constant 0 : index
    %56 = vector.load %arg8[%c0_75, %c0_76, %c0_77] : memref<1x1x8xf32, #tpu.memory_space<vmem>>, vector<1x1x8xf32>
    %57 = vector.shape_cast %56 : vector<1x1x8xf32> to vector<1x8xf32>
    %58 = vector.shape_cast %52 : vector<1x8xf32> to vector<1x1x8xf32>
    tpu.vector_store %arg8[%c0_75, %c0_76, %c0_77], %58 {strides = array<i32>} : memref<1x1x8xf32, #tpu.memory_space<vmem>>, vector<1x1x8xf32>,
    return
  }
  func.func @transform_0(%arg0: i32) -> (i32, i32, i32, i32) {
    %c0_i32 = arith.constant 0 : i32
    %c0_i32_0 = arith.constant 0 : i32
    %c0_i32_1 = arith.constant 0 : i32
    %c0_i32_2 = arith.constant 0 : i32
    return %arg0, %c0_i32, %c0_i32_0, %c0_i32_1 : i32, i32, i32, i32
  }
  func.func @transform_1(%arg0: i32) -> (i32, i32) {
    %c0_i32 = arith.constant 0 : i32
    %c0_i32_0 = arith.constant 0 : i32
    %c0_i32_1 = arith.constant 0 : i32
    return %c0_i32, %c0_i32_0 : i32, i32
  }
  func.func @transform_2(%arg0: i32) -> (i32, i32) {
    %c0_i32 = arith.constant 0 : i32
    %c0_i32_0 = arith.constant 0 : i32
    %c0_i32_1 = arith.constant 0 : i32
    return %c0_i32, %c0_i32_0 : i32, i32
  }
  func.func @transform_3(%arg0: i32) -> (i32, i32) {
    %c0_i32 = arith.constant 0 : i32
    %c0_i32_0 = arith.constant 0 : i32
    %c0_i32_1 = arith.constant 0 : i32
    return %c0_i32, %c0_i32_0 : i32, i32
  }
  func.func @transform_4(%arg0: i32) -> (i32, i32) {
    %c0_i32 = arith.constant 0 : i32
    %c0_i32_0 = arith.constant 0 : i32
    %c0_i32_1 = arith.constant 0 : i32
    return %c0_i32, %c0_i32_0 : i32, i32
  }
  func.func @transform_5(%arg0: i32) -> (i32, i32, i32) {
    %c0_i32 = arith.constant 0 : i32
    %c0_i32_0 = arith.constant 0 : i32
    %c0_i32_1 = arith.constant 0 : i32
    return %arg0, %c0_i32, %c0_i32_0 : i32, i32, i32
  }
  func.func @transform_6(%arg0: i32) -> (i32, i32, i32) {
    %c0_i32 = arith.constant 0 : i32
    %c0_i32_0 = arith.constant 0 : i32
    %c0_i32_1 = arith.constant 0 : i32
    return %arg0, %c0_i32, %c0_i32_0 : i32, i32, i32
  }
  func.func @transform_7(%arg0: i32) -> (i32, i32, i32) {
    %c0_i32 = arith.constant 0 : i32
    %c0_i32_0 = arith.constant 0 : i32
    %c0_i32_1 = arith.constant 0 : i32
    return %arg0, %c0_i32, %c0_i32_0 : i32, i32, i32
  }
}

module attributes {stable_mosaic.version = 11 : i64} {
  func.func @_pool_conv_kernel(%arg0: i32, %arg1: memref<1x8x2x8x8xf32, #tpu.memory_space<vmem>>, %arg2: memref<36x8xbf16, #tpu.memory_space<vmem>>, %arg3: memref<1x8xf32, #tpu.memory_space<vmem>>, %arg4: memref<1x64x8xf32, #tpu.memory_space<vmem>>, %arg5: memref<1x1x8xf32, #tpu.memory_space<vmem>>, %arg6: memref<1x1x8xf32, #tpu.memory_space<vmem>>, %arg7: memref<10x10x4xf32, #tpu.memory_space<vmem>>, %arg8: memref<8x8x36xf32, #tpu.memory_space<vmem>>) attributes {dimension_semantics = [#tpu.dimension_semantics<parallel>], iteration_bounds = array<i64: 2>, scalar_prefetch = 0 : i64, scratch_operands = 2 : i64, tpu.core_type = #tpu.core_type<tc>, window_params = [{transform_indices = @transform_0, window_bounds = array<i64: 1, 8, 2, 8, 8>}, {pipeline_mode = #tpu.pipeline_mode<synchronous>, transform_indices = @transform_1, window_bounds = array<i64: 36, 8>}, {pipeline_mode = #tpu.pipeline_mode<synchronous>, transform_indices = @transform_2, window_bounds = array<i64: 1, 8>}, {transform_indices = @transform_3, window_bounds = array<i64: 1, 64, 8>}, {transform_indices = @transform_4, window_bounds = array<i64: 1, 1, 8>}, {transform_indices = @transform_5, window_bounds = array<i64: 1, 1, 8>}]} {
    %c0 = arith.constant 0 : index
    %c0_0 = arith.constant 0 : index
    %c0_1 = arith.constant 0 : index
    %c0_2 = arith.constant 0 : index
    %c0_3 = arith.constant 0 : index
    %0 = vector.load %arg1[%c0, %c0_0, %c0_1, %c0_2, %c0_3] : memref<1x8x2x8x8xf32, #tpu.memory_space<vmem>>, vector<1x8x2x8x8xf32>
    %1 = vector.shape_cast %0 : vector<1x8x2x8x8xf32> to vector<8x2x8x8xf32>
    %2 = vector.extract_strided_slice %1 {offsets = [0, 0, 0, 0], sizes = [8, 1, 8, 8], strides = [1, 1, 1, 1]} : vector<8x2x8x8xf32> to vector<8x1x8x8xf32>
    %3 = vector.shape_cast %2 : vector<8x1x8x8xf32> to vector<8x8x8xf32>
    %4 = vector.extract_strided_slice %1 {offsets = [0, 1, 0, 0], sizes = [8, 1, 8, 8], strides = [1, 1, 1, 1]} : vector<8x2x8x8xf32> to vector<8x1x8x8xf32>
    %5 = vector.shape_cast %4 : vector<8x1x8x8xf32> to vector<8x8x8xf32>
    %6 = arith.maximumf %3, %5 : vector<8x8x8xf32>
    %7 = vector.extract_strided_slice %6 {offsets = [0, 0, 0], sizes = [8, 8, 4], strides = [1, 1, 1]} : vector<8x8x8xf32> to vector<8x8x4xf32>
    %8 = vector.extract_strided_slice %6 {offsets = [0, 0, 4], sizes = [8, 8, 4], strides = [1, 1, 1]} : vector<8x8x8xf32> to vector<8x8x4xf32>
    %9 = arith.maximumf %7, %8 : vector<8x8x4xf32>
    %cst = arith.constant 0.000000e+00 : f32
    %10 = vector.broadcast %cst : f32 to vector<10x10x4xf32>
    %c0_4 = arith.constant 0 : index
    %c0_5 = arith.constant 0 : index
    %c0_6 = arith.constant 0 : index
    %11 = vector.load %arg7[%c0_4, %c0_5, %c0_6] : memref<10x10x4xf32, #tpu.memory_space<vmem>>, vector<10x10x4xf32>
    tpu.vector_store %arg7[%c0_4, %c0_5, %c0_6], %10 {strides = array<i32>} : memref<10x10x4xf32, #tpu.memory_space<vmem>>, vector<10x10x4xf32>,
    %c1 = arith.constant 1 : index
    %c1_7 = arith.constant 1 : index
    %c0_8 = arith.constant 0 : index
    %12 = vector.load %arg7[%c1, %c1_7, %c0_8] : memref<10x10x4xf32, #tpu.memory_space<vmem>>, vector<8x8x4xf32>
    tpu.vector_store %arg7[%c1, %c1_7, %c0_8], %9 {strides = array<i32>} : memref<10x10x4xf32, #tpu.memory_space<vmem>>, vector<8x8x4xf32>,
    %c0_9 = arith.constant 0 : index
    %c0_10 = arith.constant 0 : index
    %c0_11 = arith.constant 0 : index
    %13 = vector.load %arg7[%c0_9, %c0_10, %c0_11] : memref<10x10x4xf32, #tpu.memory_space<vmem>>, vector<8x8x4xf32>
    %c0_12 = arith.constant 0 : index
    %c0_13 = arith.constant 0 : index
    %c0_14 = arith.constant 0 : index
    %14 = vector.load %arg8[%c0_12, %c0_13, %c0_14] : memref<8x8x36xf32, #tpu.memory_space<vmem>>, vector<8x8x4xf32>
    tpu.vector_store %arg8[%c0_12, %c0_13, %c0_14], %13 {strides = array<i32>} : memref<8x8x36xf32, #tpu.memory_space<vmem>>, vector<8x8x4xf32>,
    %c0_15 = arith.constant 0 : index
    %c1_16 = arith.constant 1 : index
    %c0_17 = arith.constant 0 : index
    %15 = vector.load %arg7[%c0_15, %c1_16, %c0_17] : memref<10x10x4xf32, #tpu.memory_space<vmem>>, vector<8x8x4xf32>
    %c0_18 = arith.constant 0 : index
    %c0_19 = arith.constant 0 : index
    %c4 = arith.constant 4 : index
    %16 = vector.load %arg8[%c0_18, %c0_19, %c4] : memref<8x8x36xf32, #tpu.memory_space<vmem>>, vector<8x8x4xf32>
    tpu.vector_store %arg8[%c0_18, %c0_19, %c4], %15 {strides = array<i32>} : memref<8x8x36xf32, #tpu.memory_space<vmem>>, vector<8x8x4xf32>,
    %c0_20 = arith.constant 0 : index
    %c2 = arith.constant 2 : index
    %c0_21 = arith.constant 0 : index
    %17 = vector.load %arg7[%c0_20, %c2, %c0_21] : memref<10x10x4xf32, #tpu.memory_space<vmem>>, vector<8x8x4xf32>
    %c0_22 = arith.constant 0 : index
    %c0_23 = arith.constant 0 : index
    %c8 = arith.constant 8 : index
    %18 = vector.load %arg8[%c0_22, %c0_23, %c8] : memref<8x8x36xf32, #tpu.memory_space<vmem>>, vector<8x8x4xf32>
    tpu.vector_store %arg8[%c0_22, %c0_23, %c8], %17 {strides = array<i32>} : memref<8x8x36xf32, #tpu.memory_space<vmem>>, vector<8x8x4xf32>,
    %c1_24 = arith.constant 1 : index
    %c0_25 = arith.constant 0 : index
    %c0_26 = arith.constant 0 : index
    %19 = vector.load %arg7[%c1_24, %c0_25, %c0_26] : memref<10x10x4xf32, #tpu.memory_space<vmem>>, vector<8x8x4xf32>
    %c0_27 = arith.constant 0 : index
    %c0_28 = arith.constant 0 : index
    %c12 = arith.constant 12 : index
    %20 = vector.load %arg8[%c0_27, %c0_28, %c12] : memref<8x8x36xf32, #tpu.memory_space<vmem>>, vector<8x8x4xf32>
    tpu.vector_store %arg8[%c0_27, %c0_28, %c12], %19 {strides = array<i32>} : memref<8x8x36xf32, #tpu.memory_space<vmem>>, vector<8x8x4xf32>,
    %c1_29 = arith.constant 1 : index
    %c1_30 = arith.constant 1 : index
    %c0_31 = arith.constant 0 : index
    %21 = vector.load %arg7[%c1_29, %c1_30, %c0_31] : memref<10x10x4xf32, #tpu.memory_space<vmem>>, vector<8x8x4xf32>
    %c0_32 = arith.constant 0 : index
    %c0_33 = arith.constant 0 : index
    %c16 = arith.constant 16 : index
    %22 = vector.load %arg8[%c0_32, %c0_33, %c16] : memref<8x8x36xf32, #tpu.memory_space<vmem>>, vector<8x8x4xf32>
    tpu.vector_store %arg8[%c0_32, %c0_33, %c16], %21 {strides = array<i32>} : memref<8x8x36xf32, #tpu.memory_space<vmem>>, vector<8x8x4xf32>,
    %c1_34 = arith.constant 1 : index
    %c2_35 = arith.constant 2 : index
    %c0_36 = arith.constant 0 : index
    %23 = vector.load %arg7[%c1_34, %c2_35, %c0_36] : memref<10x10x4xf32, #tpu.memory_space<vmem>>, vector<8x8x4xf32>
    %c0_37 = arith.constant 0 : index
    %c0_38 = arith.constant 0 : index
    %c20 = arith.constant 20 : index
    %24 = vector.load %arg8[%c0_37, %c0_38, %c20] : memref<8x8x36xf32, #tpu.memory_space<vmem>>, vector<8x8x4xf32>
    tpu.vector_store %arg8[%c0_37, %c0_38, %c20], %23 {strides = array<i32>} : memref<8x8x36xf32, #tpu.memory_space<vmem>>, vector<8x8x4xf32>,
    %c2_39 = arith.constant 2 : index
    %c0_40 = arith.constant 0 : index
    %c0_41 = arith.constant 0 : index
    %25 = vector.load %arg7[%c2_39, %c0_40, %c0_41] : memref<10x10x4xf32, #tpu.memory_space<vmem>>, vector<8x8x4xf32>
    %c0_42 = arith.constant 0 : index
    %c0_43 = arith.constant 0 : index
    %c24 = arith.constant 24 : index
    %26 = vector.load %arg8[%c0_42, %c0_43, %c24] : memref<8x8x36xf32, #tpu.memory_space<vmem>>, vector<8x8x4xf32>
    tpu.vector_store %arg8[%c0_42, %c0_43, %c24], %25 {strides = array<i32>} : memref<8x8x36xf32, #tpu.memory_space<vmem>>, vector<8x8x4xf32>,
    %c2_44 = arith.constant 2 : index
    %c1_45 = arith.constant 1 : index
    %c0_46 = arith.constant 0 : index
    %27 = vector.load %arg7[%c2_44, %c1_45, %c0_46] : memref<10x10x4xf32, #tpu.memory_space<vmem>>, vector<8x8x4xf32>
    %c0_47 = arith.constant 0 : index
    %c0_48 = arith.constant 0 : index
    %c28 = arith.constant 28 : index
    %28 = vector.load %arg8[%c0_47, %c0_48, %c28] : memref<8x8x36xf32, #tpu.memory_space<vmem>>, vector<8x8x4xf32>
    tpu.vector_store %arg8[%c0_47, %c0_48, %c28], %27 {strides = array<i32>} : memref<8x8x36xf32, #tpu.memory_space<vmem>>, vector<8x8x4xf32>,
    %c2_49 = arith.constant 2 : index
    %c2_50 = arith.constant 2 : index
    %c0_51 = arith.constant 0 : index
    %29 = vector.load %arg7[%c2_49, %c2_50, %c0_51] : memref<10x10x4xf32, #tpu.memory_space<vmem>>, vector<8x8x4xf32>
    %c0_52 = arith.constant 0 : index
    %c0_53 = arith.constant 0 : index
    %c32 = arith.constant 32 : index
    %30 = vector.load %arg8[%c0_52, %c0_53, %c32] : memref<8x8x36xf32, #tpu.memory_space<vmem>>, vector<8x8x4xf32>
    tpu.vector_store %arg8[%c0_52, %c0_53, %c32], %29 {strides = array<i32>} : memref<8x8x36xf32, #tpu.memory_space<vmem>>, vector<8x8x4xf32>,
    %c0_54 = arith.constant 0 : index
    %c0_55 = arith.constant 0 : index
    %c0_56 = arith.constant 0 : index
    %31 = vector.load %arg8[%c0_54, %c0_55, %c0_56] : memref<8x8x36xf32, #tpu.memory_space<vmem>>, vector<8x8x36xf32>
    %32 = vector.shape_cast %31 : vector<8x8x36xf32> to vector<64x36xf32>
    %33 = arith.truncf %32 : vector<64x36xf32> to vector<64x36xbf16>
    %c0_57 = arith.constant 0 : index
    %c0_58 = arith.constant 0 : index
    %34 = vector.load %arg2[%c0_57, %c0_58] : memref<36x8xbf16, #tpu.memory_space<vmem>>, vector<36x8xbf16>
    %cst_59 = arith.constant dense<0.000000e+00> : vector<64x8xf32>
    %35 = tpu.matmul %33, %34, %cst_59 {dimension_numbers = #tpu.dot_dimension_numbers<[1], [0], [0], [1], [0, 0, 1, 1], [], []>} : vector<64x36xbf16>, vector<36x8xbf16>, vector<64x8xf32> -> vector<64x8xf32>
    %c0_60 = arith.constant 0 : index
    %c0_61 = arith.constant 0 : index
    %36 = vector.load %arg3[%c0_60, %c0_61] : memref<1x8xf32, #tpu.memory_space<vmem>>, vector<1x8xf32>
    %37 = vector.broadcast %36 : vector<1x8xf32> to vector<64x8xf32>
    %38 = arith.addf %35, %37 : vector<64x8xf32>
    %c0_62 = arith.constant 0 : index
    %c0_63 = arith.constant 0 : index
    %c0_64 = arith.constant 0 : index
    %39 = vector.load %arg4[%c0_62, %c0_63, %c0_64] : memref<1x64x8xf32, #tpu.memory_space<vmem>>, vector<1x64x8xf32>
    %40 = vector.shape_cast %39 : vector<1x64x8xf32> to vector<64x8xf32>
    %41 = vector.shape_cast %38 : vector<64x8xf32> to vector<1x64x8xf32>
    tpu.vector_store %arg4[%c0_62, %c0_63, %c0_64], %41 {strides = array<i32>} : memref<1x64x8xf32, #tpu.memory_space<vmem>>, vector<1x64x8xf32>,
    %cst_65 = arith.constant dense<0.000000e+00> : vector<8xf32>
    %42 = vector.multi_reduction <add>, %38, %cst_65 [0] : vector<64x8xf32> to vector<8xf32>
    %43 = vector.shape_cast %42 : vector<8xf32> to vector<1x8xf32>
    %cst_66 = arith.constant 1.562500e-02 : f32
    %44 = vector.broadcast %cst_66 : f32 to vector<1x8xf32>
    %45 = arith.mulf %43, %44 : vector<1x8xf32>
    %46 = vector.broadcast %45 : vector<1x8xf32> to vector<64x8xf32>
    %47 = arith.subf %38, %46 : vector<64x8xf32>
    %48 = arith.mulf %47, %47 : vector<64x8xf32>
    %cst_67 = arith.constant dense<0.000000e+00> : vector<8xf32>
    %49 = vector.multi_reduction <add>, %48, %cst_67 [0] : vector<64x8xf32> to vector<8xf32>
    %50 = vector.shape_cast %49 : vector<8xf32> to vector<1x8xf32>
    %c0_68 = arith.constant 0 : index
    %c0_69 = arith.constant 0 : index
    %c0_70 = arith.constant 0 : index
    %51 = vector.load %arg5[%c0_68, %c0_69, %c0_70] : memref<1x1x8xf32, #tpu.memory_space<vmem>>, vector<1x1x8xf32>
    %52 = vector.shape_cast %51 : vector<1x1x8xf32> to vector<1x8xf32>
    %53 = vector.shape_cast %45 : vector<1x8xf32> to vector<1x1x8xf32>
    tpu.vector_store %arg5[%c0_68, %c0_69, %c0_70], %53 {strides = array<i32>} : memref<1x1x8xf32, #tpu.memory_space<vmem>>, vector<1x1x8xf32>,
    %c0_71 = arith.constant 0 : index
    %c0_72 = arith.constant 0 : index
    %c0_73 = arith.constant 0 : index
    %54 = vector.load %arg6[%c0_71, %c0_72, %c0_73] : memref<1x1x8xf32, #tpu.memory_space<vmem>>, vector<1x1x8xf32>
    %55 = vector.shape_cast %54 : vector<1x1x8xf32> to vector<1x8xf32>
    %56 = vector.shape_cast %50 : vector<1x8xf32> to vector<1x1x8xf32>
    tpu.vector_store %arg6[%c0_71, %c0_72, %c0_73], %56 {strides = array<i32>} : memref<1x1x8xf32, #tpu.memory_space<vmem>>, vector<1x1x8xf32>,
    return
  }
  func.func @transform_0(%arg0: i32) -> (i32, i32, i32, i32, i32) {
    %c0_i32 = arith.constant 0 : i32
    %c0_i32_0 = arith.constant 0 : i32
    %c0_i32_1 = arith.constant 0 : i32
    %c0_i32_2 = arith.constant 0 : i32
    %c0_i32_3 = arith.constant 0 : i32
    return %arg0, %c0_i32, %c0_i32_0, %c0_i32_1, %c0_i32_2 : i32, i32, i32, i32, i32
  }
  func.func @transform_1(%arg0: i32) -> (i32, i32) {
    %c0_i32 = arith.constant 0 : i32
    %c0_i32_0 = arith.constant 0 : i32
    %c0_i32_1 = arith.constant 0 : i32
    return %c0_i32, %c0_i32_0 : i32, i32
  }
  func.func @transform_2(%arg0: i32) -> (i32, i32) {
    %c0_i32 = arith.constant 0 : i32
    %c0_i32_0 = arith.constant 0 : i32
    %c0_i32_1 = arith.constant 0 : i32
    return %c0_i32, %c0_i32_0 : i32, i32
  }
  func.func @transform_3(%arg0: i32) -> (i32, i32, i32) {
    %c0_i32 = arith.constant 0 : i32
    %c0_i32_0 = arith.constant 0 : i32
    %c0_i32_1 = arith.constant 0 : i32
    return %arg0, %c0_i32, %c0_i32_0 : i32, i32, i32
  }
  func.func @transform_4(%arg0: i32) -> (i32, i32, i32) {
    %c0_i32 = arith.constant 0 : i32
    %c0_i32_0 = arith.constant 0 : i32
    %c0_i32_1 = arith.constant 0 : i32
    return %arg0, %c0_i32, %c0_i32_0 : i32, i32, i32
  }
  func.func @transform_5(%arg0: i32) -> (i32, i32, i32) {
    %c0_i32 = arith.constant 0 : i32
    %c0_i32_0 = arith.constant 0 : i32
    %c0_i32_1 = arith.constant 0 : i32
    return %arg0, %c0_i32, %c0_i32_0 : i32, i32, i32
  }
}

</mosaic_0001>

<bundles_post_ra>
// kernel: down_forward.5
= control target key start
LH: loop header
LB: loop body
LE: loop exit
PB: predicated region body
PF: predicated region fallthrough
CT: control target
= control target key end

     0   :  { %s332_s12 = smov 0   ;;  %s363_s0 = inlined_call_operand.vmem [shape: f32[2,64,8], index: 0, kind: input, shape index: {}]   ;;  %s364_s1 = inlined_call_operand.vmem [shape: f32[1,8], index: 1, kind: input, shape index: {}]   ;;  %s365_s2 = inlined_call_operand.vmem [shape: f32[1,8], index: 2, kind: input, shape index: {}]   ;;  %s366_s3 = inlined_call_operand.vmem [shape: f32[2,64,8], index: 3, kind: output, shape index: {}]  }
   0x1 LB: > { %s281_s13 = sadd.s32 4294967295, %s310_s12   ;;  %p285_p0 = scmp.ge.s32.totalorder %s310_s12, 1  ;;  %s310_s12 = sphi %s332_s12, %s13_s12  }
   0x2   : > { %p137_p1 = scmp.lt.s32.totalorder %s310_s12, 3 }
   0x4   : > { %p138_p2 = pnand %p285_p0, %p137_p1 }
   0x5   : > { %p161_p3 = scmp.lt.s32.totalorder (!%p138_p2), %s281_s13, 1  ;;  %v290_v0 = vld [vmem:[%s364_s1] ss:$0 sm:$0xff] (!%p138_p2)  ;;  %vm217_vm0 = vcmask (!%p138_p2), 64512  }
   0x6   : > { %141 = sbr.rel (%p138_p2) target bundleno = 27 (0x1b), region = 32  ;;  %v291_v1 = vld [vmem:[%s365_s2] ss:$0 sm:$0xff] (!%p138_p2) }
   0xd   : > { %s368_s13 = smov (!%p161_p3, %s281_s13), 1 }
   0xe   : > { %s294_s14 = sshll.u32 %s368_s13, 6 }
   0xf   : > { %s165_s19 = scalar_lea.vmem %s363_s0, %s294_s14  ;;  %s170_s24 = scalar_lea.vmem %s366_s3, %s294_s14 }
  0x10   : > { %v171_v2 = vld [vmem:[%s165_s19] sm:$0xff]  ;;  %v172_v3 = vld [vmem:[%s165_s19 + $0x8] sm:$0xff]  ;;  %v173_v4 = vld [vmem:[%s165_s19 + $0x10] sm:$0xff] }
  0x11   : > { %v186_v5 = vmul.f32 %v290_v0, %v171_v2  ;;  %v187_v6 = vmul.f32 %v290_v0, %v172_v3  ;;  %v188_v7 = vmul.f32 %v290_v0, %v173_v4  ;;  %v174_v8 = vld [vmem:[%s165_s19 + $0x18] sm:$0xff]  ;;  %v175_v9 = vld [vmem:[%s165_s19 + $0x20] sm:$0xff]  ;;  %v176_v10 = vld [vmem:[%s165_s19 + $0x28] sm:$0xff] }
  0x12   : > { %v189_v11 = vmul.f32 %v290_v0, %v174_v8  ;;  %v190_v12 = vmul.f32 %v290_v0, %v175_v9  ;;  %v191_v13 = vmul.f32 %v290_v0, %v176_v10  ;;  %v177_v14 = vld [vmem:[%s165_s19 + $0x30] sm:$0xff]  ;;  %v178_v15 = vld [vmem:[%s165_s19 + $0x38] sm:$0xff] }
  0x13   : > { %v201_v16 = vadd.f32 %v291_v1, %v186_v5  ;;  %v202_v17 = vadd.f32 %v291_v1, %v187_v6  ;;  %v203_v18 = vadd.f32 %v291_v1, %v188_v7  ;;  %v192_v19 = vmul.f32 %v290_v0, %v177_v14 }
  0x14   : > { %v204_v20 = vadd.f32 %v291_v1, %v189_v11  ;;  %v205_v21 = vadd.f32 %v291_v1, %v190_v12  ;;  %v206_v22 = vadd.f32 %v291_v1, %v191_v13  ;;  %v193_v23 = vmul.f32 %v290_v0, %v178_v15 }
  0x15   : > { %v209_v24 = vmax.f32 %v201_v16, 0.0  ;;  %v210_v25 = vmax.f32 %v202_v17, 0.0  ;;  %v211_v26 = vmax.f32 %v203_v18, 0.0  ;;  %v207_v27 = vadd.f32 %v291_v1, %v192_v19 }
  0x16   : > { %v212_v28 = vmax.f32 %v204_v20, 0.0  ;;  %v213_v29 = vmax.f32 %v205_v21, 0.0  ;;  %v214_v30 = vmax.f32 %v206_v22, 0.0  ;;  %v208_v31 = vadd.f32 %v291_v1, %v193_v23 }
  0x17   : > { %218 = vst.msk [vmem:[%s170_s24] sm:$0xff] %vm217_vm0, %v209_v24  ;;  %219 = vst.msk [vmem:[%s170_s24 + $0x8] sm:$0xff] %vm217_vm0, %v210_v25  ;;  %v215_v32 = vmax.f32 %v207_v27, 0.0 }
  0x18   : > { %220 = vst.msk [vmem:[%s170_s24 + $0x10] sm:$0xff] %vm217_vm0, %v211_v26  ;;  %221 = vst.msk [vmem:[%s170_s24 + $0x18] sm:$0xff] %vm217_vm0, %v212_v28  ;;  %v216_v33 = vmax.f32 %v208_v31, 0.0 }
  0x19   : > { %222 = vst.msk [vmem:[%s170_s24 + $0x20] sm:$0xff] %vm217_vm0, %v213_v29  ;;  %223 = vst.msk [vmem:[%s170_s24 + $0x28] sm:$0xff] %vm217_vm0, %v214_v30 }
  0x1a   : > { %224 = vst.msk [vmem:[%s170_s24 + $0x30] sm:$0xff] %vm217_vm0, %v215_v32  ;;  %225 = vst.msk [vmem:[%s170_s24 + $0x38] sm:$0xff] %vm217_vm0, %v216_v33 }
  0x1b PF: > { %s13_s12 = sadd.s32 1, %s310_s12  }
  0x1c   : > { %p10_p4 = scmp.ge.s32.totalorder %s13_s12, 4  }
  0x1e   :  { %12 = sbr.rel (!%p10_p4) target bundleno = 1 (0x1), region = 62 }

// kernel: down_forward.4
= control target key start
LH: loop header
LB: loop body
LE: loop exit
PB: predicated region body
PF: predicated region fallthrough
CT: control target
= control target key end

     0   :  { %s1238_s24 = smov 0   ;;  %s1519_s0 = inlined_call_operand.vmem [shape: f32[2,8,8,8], index: 0, kind: input, shape index: {}]   ;;  %s1520_s1 = inlined_call_operand.vmem [shape: f32[1,8], index: 1, kind: input, shape index: {}]   ;;  %s1521_s2 = inlined_call_operand.vmem [shape: f32[1,8], index: 2, kind: input, shape index: {}]   ;;  %s1522_s3 = inlined_call_operand.vmem [shape: bf16[72,8], index: 3, kind: input, shape index: {}]   ;;  %s1523_s4 = inlined_call_operand.vmem [shape: f32[1,8], index: 4, kind: input, shape index: {}]   ;;  %s1524_s5 = inlined_call_operand.vmem [shape: f32[2,64,8], index: 5, kind: output, shape index: {0}]   ;;  %s1525_s6 = inlined_call_operand.vmem [shape: f32[2,1,8], index: 6, kind: output, shape index: {1}]   ;;  %s1526_s7 = inlined_call_operand.vmem [shape: f32[2,1,8], index: 7, kind: output, shape index: {2}]  }
   0x1 LB: > { %s1095_s25 = sadd.s32 4294967295, %s1187_s24   ;;  %p1099_p0 = scmp.ge.s32.totalorder %s1187_s24, 1  ;;  %s1187_s24 = sphi %s1238_s24, %s18_s24  }
   0x2   : > { %p242_p1 = scmp.lt.s32.totalorder %s1187_s24, 3 }
   0x4   : > { %p243_p2 = pnand %p1099_p0, %p242_p1 }
   0x5   : > { %vm343_vm0 = vcmask (!%p243_p2), 64512   ;;  %vm345_vm1 = vcmask (!%p243_p2), 58368   ;;  %p1246_p3 = scmp.lt.s32.totalorder (!%p243_p2), %s1095_s25, 1  ;;  %v1189_v0 = vmov (!%p243_p2), 0.0   ;;  %v1104_v1 = vld [vmem:[%s1520_s1] ss:$0 sm:$0xff] (!%p243_p2) }
   0x6   : > { %246 = sbr.rel (%p243_p2) target bundleno = 550 (0x226), region = 40  ;;  %344 = vst.msk [vmem:[#allocation2] sm:$0xff] (!%p243_p2), %vm343_vm0, %v1189_v0  ;;  %347 = vst.msk [vmem:[#allocation2 + $0x10] sm:$0xff] (!%p243_p2), %vm343_vm0, %v1189_v0  ;;  %v1105_v2 = vld [vmem:[%s1521_s2] ss:$0 sm:$0xff] (!%p243_p2)  ;;  %s1190_s12 = smov (!%p243_p2), 8  }
   0x7   : > { %346 = vst.msk [vmem:[#allocation2 + $0x8] sm:$0x3] (!%p243_p2), %vm345_vm1, %v1189_v0  ;;  %348 = vst.msk [vmem:[#allocation2 + $0x18] sm:$0x3] (!%p243_p2), %vm345_vm1, %v1189_v0  ;;  %s1191_s13 = smov (!%p243_p2), 16   ;;  %s1192_s14 = smov (!%p243_p2), 24  }
   0x8   : > { %349 = vst.msk [vmem:[#allocation2 + $0x20] sm:$0xff] (!%p243_p2), %vm343_vm0, %v1189_v0  ;;  %351 = vst.msk [vmem:[#allocation2 + $0x30] sm:$0xff] (!%p243_p2), %vm343_vm0, %v1189_v0  ;;  %s1193_s15 = smov (!%p243_p2), 32   ;;  %s1194_s16 = smov (!%p243_p2), 40   ;;  %v1176_v53 = vld [vmem:[%s1522_s3] sm:$0xff] (!%p243_p2)   ;;  %v1177_v54 = vld [vmem:[%s1522_s3 + $0x8] sm:$0xff] (!%p243_p2)  }
   0x9   : > { %350 = vst.msk [vmem:[#allocation2 + $0x28] sm:$0x3] (!%p243_p2), %vm345_vm1, %v1189_v0  ;;  %352 = vst.msk [vmem:[#allocation2 + $0x38] sm:$0x3] (!%p243_p2), %vm345_vm1, %v1189_v0  ;;  %s1195_s17 = smov (!%p243_p2), 48   ;;  %s1196_s20 = smov (!%p243_p2), 56   ;;  %1129 = vmatprep.subr.bf16.mxu0 (!%p243_p2), %v1176_v53  ;;  %1147 = vmatprep.subr.bf16.mxu1 (!%p243_p2), %v1176_v53 }
   0xa   : > { %353 = vst.msk [vmem:[#allocation2 + $0x40] sm:$0xff] (!%p243_p2), %vm343_vm0, %v1189_v0  ;;  %355 = vst.msk [vmem:[#allocation2 + $0x50] sm:$0xff] (!%p243_p2), %vm343_vm0, %v1189_v0  ;;  %1130 = vmatpush3.bf16.msra.mxu0 (!%p243_p2), %v1176_v53  ;;  %1152 = vmatpush3.bf16.msra.mxu1 (!%p243_p2), %v1176_v53  ;;  %v1178_v55 = vld [vmem:[%s1522_s3 + $0x10] sm:$0xff] (!%p243_p2)   ;;  %s1197_s27 = smov (!%p243_p2), 64   ;;  %v1179_v57 = vld [vmem:[%s1522_s3 + $0x18] sm:$0xff] (!%p243_p2)   ;;  %vm851_vm2 = vcmask (!%p243_p2), 1043456  }
   0xb   : > { %354 = vst.msk [vmem:[#allocation2 + $0x48] sm:$0x3] (!%p243_p2), %vm345_vm1, %v1189_v0  ;;  %356 = vst.msk [vmem:[#allocation2 + $0x58] sm:$0x3] (!%p243_p2), %vm345_vm1, %v1189_v0  ;;  %1131 = vmatprep.subr.bf16.mxu0 (!%p243_p2), %v1177_v54  ;;  %1148 = vmatprep.subr.bf16.mxu1 (!%p243_p2), %v1177_v54  ;;  %v1180_v58 = vld [vmem:[%s1522_s3 + $0x20] ss:$0 sps:$4 sm:$0xff] (!%p243_p2)  }
   0xc   : > { %357 = vst.msk [vmem:[#allocation2 + $0x60] sm:$0xff] (!%p243_p2), %vm343_vm0, %v1189_v0  ;;  %359 = vst.msk [vmem:[#allocation2 + $0x70] sm:$0xff] (!%p243_p2), %vm343_vm0, %v1189_v0  ;;  %v853_v60 = vsel (!%p243_p2), %vm851_vm2, %v1180_v58, 0  ;;  %vm430_vm3 = vcmask (!%p243_p2), 130112   ;;  %vm479_vm4 = vcmask (!%p243_p2), 195712   ;;  %vm528_vm5 = vcmask (!%p243_p2), 261312  }
   0xd   : > { %358 = vst.msk [vmem:[#allocation2 + $0x68] sm:$0x3] %vm345_vm1, %v1189_v0  ;;  %360 = vst.msk [vmem:[#allocation2 + $0x78] sm:$0x3] %vm345_vm1, %v1189_v0  ;;  %s1529_s25 = smov (!%p1246_p3, %s1095_s25), 1  ;;  %v374_v22 = vld [vmem:[#allocation2] sm:$0xff] }
   0xe   : > { %361 = vst.msk [vmem:[#allocation2 + $0x80] sm:$0xff] %vm343_vm0, %v1189_v0  ;;  %363 = vst.msk [vmem:[#allocation2 + $0x90] sm:$0xff] %vm343_vm0, %v1189_v0  ;;  %s1118_s29 = sshll.u32 %s1529_s25, 6  ;;  %v390_v12 = vld [vmem:[#allocation2 + $0x1] sm:$0xff]  ;;  %1132 = vmatpush3.bf16.msra.mxu0 %v1177_v54  ;;  %1153 = vmatpush3.bf16.msra.mxu1 %v1177_v54  ;;  %vm577_vm6 = vcmask 326912   ;;  %vm626_vm7 = vcmask 392512   ;;  %s295_s19 = scalar_lea.vmem %s1526_s7, %s1529_s25 }
   0xf   : > { %362 = vst.msk [vmem:[#allocation2 + $0x88] sm:$0x3] %vm345_vm1, %v1189_v0  ;;  %364 = vst.msk [vmem:[#allocation2 + $0x98] sm:$0x3] %vm345_vm1, %v1189_v0  ;;  %s284_s9 = scalar_lea.vmem %s1519_s0, %s1118_s29  ;;  %406 = vrot.lane.b32.xlu0 %v390_v12, %s1190_s12  ;;  %v439_v23 = vld [vmem:[#allocation2 + $0x2] sm:$0xff]  ;;  %1133 = vmatprep.subr.bf16.mxu0 %v1178_v55  ;;  %vm676_vm8 = vcmask 458112  }
  0x10   : > { %v298_v3 = vld [vmem:[%s284_s9 + $0x8] sm:$0xff]  ;;  %v299_v4 = vld [vmem:[%s284_s9 + $0x10] sm:$0xff]  ;;  %v297_v5 = vld [vmem:[%s284_s9] sm:$0xff]  ;;  %382 = vst.msk [vmem:[#allocation3] sm:$0xff] %vm343_vm0, %v374_v22  ;;  %1149 = vmatprep.subr.bf16.mxu1 %v1178_v55  ;;  %vm725_vm9 = vcmask 523712   ;;  %vm774_vm10 = vcmask 589312  }
  0x11   : > { %v313_v6 = vmul.f32 %v1104_v1, %v298_v3  ;;  %v314_v7 = vmul.f32 %v1104_v1, %v299_v4  ;;  %v312_v8 = vmul.f32 %v1104_v1, %v297_v5  ;;  %v300_v9 = vld [vmem:[%s284_s9 + $0x18] sm:$0xff]  ;;  %v301_v10 = vld [vmem:[%s284_s9 + $0x20] sm:$0xff]  ;;  %v303_v11 = vld [vmem:[%s284_s9 + $0x30] sm:$0xff]  ;;  %vm838_vm11 = vcmask 588800  }
  0x12   : > { %v315_v13 = vmul.f32 %v1104_v1, %v300_v9  ;;  %v316_v14 = vmul.f32 %v1104_v1, %v301_v10  ;;  %v318_v15 = vmul.f32 %v1104_v1, %v303_v11  ;;  %v302_v16 = vld [vmem:[%s284_s9 + $0x28] sm:$0xff]  ;;  %v304_v21 = vld [vmem:[%s284_s9 + $0x38] sm:$0xff]  ;;  %1134 = vmatpush3.bf16.msra.mxu0 %v1178_v55  ;;  %1154 = vmatpush3.bf16.msra.mxu1 %v1178_v55  ;;  %vm987_vm12 = vcmask 57344  }
  0x13   : > { %v328_v17 = vadd.f32 %v1105_v2, %v313_v6  ;;  %v329_v18 = vadd.f32 %v1105_v2, %v314_v7  ;;  %v327_v19 = vadd.f32 %v1105_v2, %v312_v8  ;;  %v317_v20 = vmul.f32 %v1104_v1, %v302_v16  ;;  %455 = vrot.lane.b32.xlu0 %v439_v23, %s1191_s13 }
  0x14   : > { %v330_v24 = vadd.f32 %v1105_v2, %v315_v13  ;;  %v331_v25 = vadd.f32 %v1105_v2, %v316_v14  ;;  %v333_v26 = vadd.f32 %v1105_v2, %v318_v15  ;;  %v319_v27 = vmul.f32 %v1104_v1, %v304_v21  ;;  %1135 = vmatprep.subr.bf16.mxu0 %v1179_v57 }
  0x15   : > { %v336_v28 = vmax.f32 %v328_v17, 0.0  ;;  %v337_v29 = vmax.f32 %v329_v18, 0.0  ;;  %v335_v30 = vmax.f32 %v327_v19, 0.0  ;;  %v332_v31 = vadd.f32 %v1105_v2, %v317_v20  ;;  %1150 = vmatprep.subr.bf16.mxu1 %v1179_v57  ;;  %v643_v5 = vld [vmem:[#allocation2 + $0x90] sm:$0xff] }
  0x16   : > { %v338_v32 = vmax.f32 %v330_v24, 0.0  ;;  %v339_v33 = vmax.f32 %v331_v25, 0.0  ;;  %v341_v34 = vmax.f32 %v333_v26, 0.0  ;;  %v334_v35 = vadd.f32 %v1105_v2, %v319_v27  ;;  %1136 = vmatpush3.bf16.msra.mxu0 %v1179_v57  ;;  %1155 = vmatpush3.bf16.msra.mxu1 %v1179_v57  ;;  %v692_v7 = vld [vmem:[#allocation2 + $0x91] sm:$0xff] }
  0x17   : > { %367 = vst.msk [vmem:[#allocation2 + $0x21] sm:$0xff] %vm343_vm0, %v336_v28  ;;  %368 = vst.msk [vmem:[#allocation2 + $0x31] sm:$0xff] %vm343_vm0, %v337_v29  ;;  %v340_v36 = vmax.f32 %v332_v31, 0.0  ;;  %1157 = vmatprep.subr.msk.bf16.mxu0 %vm851_vm2, %v1180_v58  ;;  %1158 = vmatprep.subr.msk.bf16.mxu1 %vm851_vm2, %v1180_v58  ;;  %v741_v12 = vld [vmem:[#allocation2 + $0x92] sm:$0xff] }
  0x18   : > { %366 = vst.msk [vmem:[#allocation2 + $0x11] sm:$0xff] %vm343_vm0, %v335_v30  ;;  %369 = vst.msk [vmem:[#allocation2 + $0x41] sm:$0xff] %vm343_vm0, %v338_v32  ;;  %v342_v37 = vmax.f32 %v334_v35, 0.0 }
  0x19   : > { %370 = vst.msk [vmem:[#allocation2 + $0x51] sm:$0xff] %vm343_vm0, %v339_v33  ;;  %372 = vst.msk [vmem:[#allocation2 + $0x71] sm:$0xff] %vm343_vm0, %v341_v34 }
  0x1a   : > { %371 = vst.msk [vmem:[#allocation2 + $0x61] sm:$0xff] %vm343_vm0, %v340_v36  ;;  %373 = vst.msk [vmem:[#allocation2 + $0x81] sm:$0xff] %vm343_vm0, %v342_v37  ;;  %1138 = vmatpush3.bf16.msra.mxu0 %v853_v60  ;;  %1156 = vmatpush3.bf16.msra.mxu1 %v853_v60 }
  0x1e   : > { %v392_v38 = vld [vmem:[#allocation2 + $0x21] sm:$0xff]  ;;  %v393_v40 = vld [vmem:[#allocation2 + $0x31] sm:$0xff] }
  0x1f   : > { %v391_v39 = vld [vmem:[#allocation2 + $0x11] sm:$0xff]  ;;  %410 = vrot.lane.b32.xlu1 %v392_v38, %s1190_s12  ;;  %v441_v41 = vld [vmem:[#allocation2 + $0x22] sm:$0xff] }
  0x20   : > { %408 = vrot.lane.b32.xlu0 %v391_v39, %s1190_s12  ;;  %v489_v42 = vld [vmem:[#allocation2 + $0x20] sm:$0xff]  ;;  %v488_v43 = vld [vmem:[#allocation2 + $0x10] sm:$0xff] }
  0x21   : > { %v491_v44 = vld [vmem:[#allocation2 + $0x40] sm:$0xff]  ;;  %v490_v45 = vld [vmem:[#allocation2 + $0x30] sm:$0xff]  ;;  %384 = vst.msk [vmem:[#allocation3 + $0x10] sm:$0xff] %vm343_vm0, %v489_v42  ;;  %383 = vst.msk [vmem:[#allocation3 + $0x8] sm:$0xff] %vm343_vm0, %v488_v43 }
  0x22   : > { %386 = vst.msk [vmem:[#allocation3 + $0x20] sm:$0xff] %vm343_vm0, %v491_v44  ;;  %v1302_v46 = vld [vmem:[#allocation2 + $0x50] sm:$0xff]  ;;  %385 = vst.msk [vmem:[#allocation3 + $0x18] sm:$0xff] %vm343_vm0, %v490_v45  ;;  %v1309_v48 = vld [vmem:[#allocation2 + $0x60] sm:$0xff] }
  0x23   : > { %412 = vrot.lane.b32.xlu1 %v393_v40, %s1190_s12  ;;  %387 = vst.msk [vmem:[#allocation3 + $0x28] sm:$0xff] %vm343_vm0, %v1302_v46  ;;  %v440_v47 = vld [vmem:[#allocation2 + $0x12] sm:$0xff]  ;;  %388 = vst.msk [vmem:[#allocation3 + $0x30] sm:$0xff] %vm343_vm0, %v1309_v48  ;;  %v540_v51 = vld [vmem:[#allocation2 + $0x41] sm:$0xff] }
  0x24   : > { %459 = vrot.lane.b32.xlu0 %v441_v41, %s1191_s13  ;;  %v1311_v49 = vld [vmem:[#allocation2 + $0x70] sm:$0xff]  ;;  %v589_v52 = vld [vmem:[#allocation2 + $0x42] sm:$0xff] }
  0x25   : > { %389 = vst.msk [vmem:[#allocation3 + $0x38] sm:$0xff] %vm343_vm0, %v1311_v49  ;;  %v442_v50 = vld [vmem:[#allocation2 + $0x32] sm:$0xff]  ;;  %v396_v59 = vld [vmem:[#allocation2 + $0x61] sm:$0xff] }
  0x26   : > { %v688_v56 = vld [vmem:[#allocation2 + $0x51] sm:$0xff]  ;;  %v445_v63 = vld [vmem:[#allocation2 + $0x62] sm:$0xff] }
  0x27   : > { %457 = vrot.lane.b32.xlu1 %v440_v47, %s1191_s13  ;;  %v737_v61 = vld [vmem:[#allocation2 + $0x52] sm:$0xff]  ;;  %v495_v1 = vld [vmem:[#allocation2 + $0x80] sm:$0xff] }
  0x28   : > { %504 = vrot.lane.b32.xlu0 %v488_v43, %s1192_s14  ;;  %v397_v62 = vld [vmem:[#allocation2 + $0x71] sm:$0xff]  ;;  %v544_v2 = vld [vmem:[#allocation2 + $0x81] sm:$0xff] }
  0x29   : > { %v446_v0 = vld [vmem:[#allocation2 + $0x72] sm:$0xff]  ;;  %v593_v3 = vld [vmem:[#allocation2 + $0x82] sm:$0xff] }
  0x2b   : > { %461 = vrot.lane.b32.xlu1 %v442_v50, %s1191_s13 }
  0x2c   : > { %508 = vrot.lane.b32.xlu0 %v490_v45, %s1192_s14 }
  0x2f   : > { %506 = vrot.lane.b32.xlu1 %v489_v42, %s1192_s14 }
  0x30   : > { %553 = vrot.lane.b32.xlu0 %v391_v39, %s1193_s15 }
  0x33   : > { %510 = vrot.lane.b32.xlu1 %v491_v44, %s1192_s14 }
  0x34   : > { %557 = vrot.lane.b32.xlu0 %v393_v40, %s1193_s15 }
  0x37   : > { %555 = vrot.lane.b32.xlu1 %v392_v38, %s1193_s15 }
  0x38   : > { %602 = vrot.lane.b32.xlu0 %v440_v47, %s1194_s16 }
  0x3b   : > { %559 = vrot.lane.b32.xlu1 %v540_v51, %s1193_s15 }
  0x3c   : > { %606 = vrot.lane.b32.xlu0 %v442_v50, %s1194_s16 }
  0x3f   : > { %604 = vrot.lane.b32.xlu1 %v441_v41, %s1194_s16 }
  0x40   : > { %652 = vrot.lane.b32.xlu0 %v489_v42, %s1195_s17 }
  0x43   : > { %608 = vrot.lane.b32.xlu1 %v589_v52, %s1194_s16 }
  0x44   : > { %656 = vrot.lane.b32.xlu0 %v491_v44, %s1195_s17 }
  0x47   : > { %654 = vrot.lane.b32.xlu1 %v490_v45, %s1195_s17 }
  0x48   : > { %701 = vrot.lane.b32.xlu0 %v392_v38, %s1196_s20 }
  0x4b   : > { %658 = vrot.lane.b32.xlu1 %v1302_v46, %s1195_s17 }
  0x4c   : > { %705 = vrot.lane.b32.xlu0 %v540_v51, %s1196_s20 }
  0x4f   : > { %703 = vrot.lane.b32.xlu1 %v393_v40, %s1196_s20 }
  0x50   : > { %750 = vrot.lane.b32.xlu0 %v441_v41, %s1197_s27 }
  0x53   : > { %707 = vrot.lane.b32.xlu1 %v688_v56, %s1196_s20 }
  0x54   : > { %414 = vrot.lane.b32.xlu0 %v540_v51, %s1190_s12 }
  0x57   : > { %752 = vrot.lane.b32.xlu1 %v442_v50, %s1197_s27 }
  0x58   : > { %754 = vrot.lane.b32.xlu0 %v589_v52, %s1197_s27 }
  0x5b   : > { %416 = vrot.lane.b32.xlu1 %v688_v56, %s1190_s12 }
  0x5c   : > { %418 = vrot.lane.b32.xlu0 %v396_v59, %s1190_s12 }
  0x5f   : > { %756 = vrot.lane.b32.xlu1 %v737_v61, %s1197_s27 }
  0x60   : > { %463 = vrot.lane.b32.xlu0 %v589_v52, %s1191_s13 }
  0x63   : > { %420 = vrot.lane.b32.xlu1 %v397_v62, %s1190_s12 }
  0x64   : > { %467 = vrot.lane.b32.xlu0 %v445_v63, %s1191_s13 }
  0x67   : > { %465 = vrot.lane.b32.xlu1 %v737_v61, %s1191_s13 }
  0x68   : > { %512 = vrot.lane.b32.xlu0 %v1302_v46, %s1192_s14 }
  0x6b   : > { %469 = vrot.lane.b32.xlu1 %v446_v0, %s1191_s13 }
  0x6c   : > { %516 = vrot.lane.b32.xlu0 %v1311_v49, %s1192_s14 }
  0x6f   : > { %514 = vrot.lane.b32.xlu1 %v1309_v48, %s1192_s14 }
  0x70   : > { %561 = vrot.lane.b32.xlu0 %v688_v56, %s1193_s15 }
  0x73   : > { %518 = vrot.lane.b32.xlu1 %v495_v1, %s1192_s14  ;;  %s1472_s14 = scalar_lea.vmem %s1524_s5, %s1118_s29 }
  0x74   : > { %565 = vrot.lane.b32.xlu0 %v397_v62, %s1193_s15 }
  0x77   : > { %563 = vrot.lane.b32.xlu1 %v396_v59, %s1193_s15 }
  0x78   : > { %610 = vrot.lane.b32.xlu0 %v737_v61, %s1194_s16 }
  0x7b   : > { %567 = vrot.lane.b32.xlu1 %v544_v2, %s1193_s15 }
  0x7c   : > { %614 = vrot.lane.b32.xlu0 %v446_v0, %s1194_s16 }
  0x7f   : > { %612 = vrot.lane.b32.xlu1 %v445_v63, %s1194_s16 }
  0x80   : > { %660 = vrot.lane.b32.xlu0 %v1309_v48, %s1195_s17 }
  0x81   : > { %v407_v4 = vpop.permute.xlu0 %406 }
  0x82   : > { %431 = vst.msk [vmem:[#allocation3] sm:$0xff] %vm430_vm3, %v407_v4 }
  0x83   : > { %616 = vrot.lane.b32.xlu1 %v593_v3, %s1194_s16  ;;  %s292_s16 = scalar_lea.vmem %s1525_s6, %s1529_s25 }
  0x84   : > { %664 = vrot.lane.b32.xlu0 %v495_v1, %s1195_s17 }
  0x85   : > { %v456_v6 = vpop.permute.xlu0 %455 }
  0x86   : > { %480 = vst.msk [vmem:[#allocation3] sm:$0xff] %vm479_vm4, %v456_v6 }
  0x87   : > { %662 = vrot.lane.b32.xlu1 %v1311_v49, %s1195_s17 }
  0x88   : > { %709 = vrot.lane.b32.xlu0 %v396_v59, %s1196_s20 }
  0x8b   : > { %666 = vrot.lane.b32.xlu1 %v643_v5, %s1195_s17 }
  0x8c   : > { %713 = vrot.lane.b32.xlu0 %v544_v2, %s1196_s20 }
  0x8f   : > { %711 = vrot.lane.b32.xlu1 %v397_v62, %s1196_s20 }
  0x90   : > { %758 = vrot.lane.b32.xlu0 %v445_v63, %s1197_s27 }
  0x91   : > { %v411_v8 = vpop.permute.xlu1 %410 }
  0x92   : > { %v409_v9 = vpop.permute.xlu0 %408  ;;  %433 = vst.msk [vmem:[#allocation3 + $0x10] sm:$0xff] %vm430_vm3, %v411_v8 }
  0x93   : > { %432 = vst.msk [vmem:[#allocation3 + $0x8] sm:$0xff] %vm430_vm3, %v409_v9  ;;  %715 = vrot.lane.b32.xlu1 %v692_v7, %s1196_s20 }
  0x94   : > { %762 = vrot.lane.b32.xlu0 %v593_v3, %s1197_s27 }
  0x95   : > { %v413_v10 = vpop.permute.xlu1 %412 }
  0x96   : > { %v460_v11 = vpop.permute.xlu0 %459  ;;  %434 = vst.msk [vmem:[#allocation3 + $0x18] sm:$0xff] %vm430_vm3, %v413_v10 }
  0x97   : > { %482 = vst.msk [vmem:[#allocation3 + $0x10] sm:$0xff] %vm479_vm4, %v460_v11  ;;  %760 = vrot.lane.b32.xlu1 %v446_v0, %s1197_s27 }
  0x99   : > { %v458_v13 = vpop.permute.xlu1 %457 }
  0x9a   : > { %v505_v14 = vpop.permute.xlu0 %504  ;;  %481 = vst.msk [vmem:[#allocation3 + $0x8] sm:$0xff] %vm479_vm4, %v458_v13 }
  0x9b   : > { %529 = vst.msk [vmem:[#allocation3] sm:$0xff] %vm528_vm5, %v505_v14  ;;  %764 = vrot.lane.b32.xlu1 %v741_v12, %s1197_s27 }
  0x9d   : > { %v462_v15 = vpop.permute.xlu1 %461 }
  0x9e   : > { %v509_v16 = vpop.permute.xlu0 %508  ;;  %483 = vst.msk [vmem:[#allocation3 + $0x18] sm:$0xff] %vm479_vm4, %v462_v15 }
  0x9f   : > { %531 = vst.msk [vmem:[#allocation3 + $0x10] sm:$0xff] %vm528_vm5, %v509_v16 }
  0xa1   : > { %v507_v17 = vpop.permute.xlu1 %506 }
  0xa2   : > { %v554_v18 = vpop.permute.xlu0 %553  ;;  %530 = vst.msk [vmem:[#allocation3 + $0x8] sm:$0xff] %vm528_vm5, %v507_v17 }
  0xa3   : > { %578 = vst.msk [vmem:[#allocation3] sm:$0xff] %vm577_vm6, %v554_v18 }
  0xa5   : > { %v511_v19 = vpop.permute.xlu1 %510 }
  0xa6   : > { %v558_v20 = vpop.permute.xlu0 %557  ;;  %532 = vst.msk [vmem:[#allocation3 + $0x18] sm:$0xff] %vm528_vm5, %v511_v19  ;;  %v1106_v19 = vld [vmem:[%s1523_s4] ss:$0 sm:$0xff] }
  0xa7   : > { %580 = vst.msk [vmem:[#allocation3 + $0x10] sm:$0xff] %vm577_vm6, %v558_v20 }
  0xa9   : > { %v556_v21 = vpop.permute.xlu1 %555 }
  0xaa   : > { %v603_v22 = vpop.permute.xlu0 %602  ;;  %579 = vst.msk [vmem:[#allocation3 + $0x8] sm:$0xff] %vm577_vm6, %v556_v21 }
  0xab   : > { %627 = vst.msk [vmem:[#allocation3] sm:$0xff] %vm626_vm7, %v603_v22 }
  0xad   : > { %v560_v23 = vpop.permute.xlu1 %559 }
  0xae   : > { %v607_v24 = vpop.permute.xlu0 %606  ;;  %581 = vst.msk [vmem:[#allocation3 + $0x18] sm:$0xff] %vm577_vm6, %v560_v23 }
  0xaf   : > { %629 = vst.msk [vmem:[#allocation3 + $0x10] sm:$0xff] %vm626_vm7, %v607_v24 }
  0xb1   : > { %v605_v25 = vpop.permute.xlu1 %604 }
  0xb2   : > { %v653_v26 = vpop.permute.xlu0 %652  ;;  %628 = vst.msk [vmem:[#allocation3 + $0x8] sm:$0xff] %vm626_vm7, %v605_v25 }
  0xb3   : > { %677 = vst.msk [vmem:[#allocation3] sm:$0xff] %vm676_vm8, %v653_v26 }
  0xb5   : > { %v609_v27 = vpop.permute.xlu1 %608 }
  0xb6   : > { %v657_v28 = vpop.permute.xlu0 %656  ;;  %630 = vst.msk [vmem:[#allocation3 + $0x18] sm:$0xff] %vm626_vm7, %v609_v27 }
  0xb7   : > { %679 = vst.msk [vmem:[#allocation3 + $0x10] sm:$0xff] %vm676_vm8, %v657_v28 }
  0xb9   : > { %v655_v29 = vpop.permute.xlu1 %654 }
  0xba   : > { %v702_v30 = vpop.permute.xlu0 %701  ;;  %678 = vst.msk [vmem:[#allocation3 + $0x8] sm:$0xff] %vm676_vm8, %v655_v29 }
  0xbb   : > { %726 = vst.msk [vmem:[#allocation3] sm:$0xff] %vm725_vm9, %v702_v30 }
  0xbd   : > { %v659_v31 = vpop.permute.xlu1 %658 }
  0xbe   : > { %v706_v32 = vpop.permute.xlu0 %705  ;;  %680 = vst.msk [vmem:[#allocation3 + $0x18] sm:$0xff] %vm676_vm8, %v659_v31 }
  0xbf   : > { %728 = vst.msk [vmem:[#allocation3 + $0x10] sm:$0xff] %vm725_vm9, %v706_v32 }
  0xc1   : > { %v704_v33 = vpop.permute.xlu1 %703 }
  0xc2   : > { %v751_v34 = vpop.permute.xlu0 %750  ;;  %727 = vst.msk [vmem:[#allocation3 + $0x8] sm:$0xff] %vm725_vm9, %v704_v33 }
  0xc3   : > { %775 = vst.msk [vmem:[#allocation3] sm:$0xff] %vm774_vm10, %v751_v34 }
  0xc5   : > { %v708_v35 = vpop.permute.xlu1 %707 }
  0xc6   : > { %v415_v36 = vpop.permute.xlu0 %414  ;;  %729 = vst.msk [vmem:[#allocation3 + $0x18] sm:$0xff] %vm725_vm9, %v708_v35 }
  0xc7   : > { %435 = vst.msk [vmem:[#allocation3 + $0x20] sm:$0xff] %vm430_vm3, %v415_v36 }
  0xc9   : > { %v753_v37 = vpop.permute.xlu1 %752 }
  0xca   : > { %v755_v38 = vpop.permute.xlu0 %754  ;;  %776 = vst.msk [vmem:[#allocation3 + $0x8] sm:$0xff] %vm774_vm10, %v753_v37  ;;  %v783_v41 = vld [vmem:[#allocation3] sm:$0xff] }
  0xcb   : > { %777 = vst.msk [vmem:[#allocation3 + $0x10] sm:$0xff] %vm774_vm10, %v755_v38 }
  0xcd   : > { %v417_v39 = vpop.permute.xlu1 %416 }
  0xce   : > { %v419_v40 = vpop.permute.xlu0 %418  ;;  %436 = vst.msk [vmem:[#allocation3 + $0x28] sm:$0xff] %vm430_vm3, %v417_v39 }
  0xcf   : > { %437 = vst.msk [vmem:[#allocation3 + $0x30] sm:$0xff] %vm430_vm3, %v419_v40 }
  0xd1   : > { %v757_v42 = vpop.permute.xlu1 %756  ;;  %v784_v43 = vld [vmem:[#allocation3 + $0x8] sm:$0xff] }
  0xd2   : > { %v464_v44 = vpop.permute.xlu0 %463  ;;  %778 = vst.msk [vmem:[#allocation3 + $0x18] sm:$0xff] %vm774_vm10, %v757_v42  ;;  %v791_v45 = vpack.c.bf16 %v784_v43, %v783_v41  ;;  %v785_v48 = vld [vmem:[#allocation3 + $0x10] sm:$0xff] }
  0xd3   : > { %484 = vst.msk [vmem:[#allocation3 + $0x20] sm:$0xff] %vm479_vm4, %v464_v44 }
  0xd4   : > { %1139 = vmatprep.mubr.msk.bf16.mxu0 %vm838_vm11, %v791_v45 }
  0xd5   : > { %v421_v46 = vpop.permute.xlu1 %420 }
  0xd6   : > { %v468_v47 = vpop.permute.xlu0 %467  ;;  %438 = vst.msk [vmem:[#allocation3 + $0x38] sm:$0xff] %vm430_vm3, %v421_v46 }
  0xd7   : > { %486 = vst.msk [vmem:[#allocation3 + $0x30] sm:$0xff] %vm479_vm4, %v468_v47 }
  0xd9   : > { %v466_v49 = vpop.permute.xlu1 %465  ;;  %v786_v50 = vld [vmem:[#allocation3 + $0x18] sm:$0xff] }
  0xda   : > { %v513_v51 = vpop.permute.xlu0 %512  ;;  %485 = vst.msk [vmem:[#allocation3 + $0x28] sm:$0xff] %vm479_vm4, %v466_v49  ;;  %v792_v52 = vpack.c.bf16 %v786_v50, %v785_v48 }
  0xdb   : > { %533 = vst.msk [vmem:[#allocation3 + $0x20] sm:$0xff] %vm528_vm5, %v513_v51 }
  0xdc   : > { %1140 = vmatmul.mubr.msk.bf16.vlgmr.msra.gmra.mrb[0].mxu0 %vm838_vm11, %v792_v52 }
  0xdd   : > { %v470_v53 = vpop.permute.xlu1 %469 }
  0xde   : > { %v517_v54 = vpop.permute.xlu0 %516  ;;  %487 = vst.msk [vmem:[#allocation3 + $0x38] sm:$0xff] %vm479_vm4, %v470_v53 }
  0xdf   : > { %535 = vst.msk [vmem:[#allocation3 + $0x30] sm:$0xff] %vm528_vm5, %v517_v54 }
  0xe1   : > { %v515_v55 = vpop.permute.xlu1 %514 }
  0xe2   : > { %v562_v56 = vpop.permute.xlu0 %561  ;;  %534 = vst.msk [vmem:[#allocation3 + $0x28] sm:$0xff] %vm528_vm5, %v515_v55 }
  0xe3   : > { %582 = vst.msk [vmem:[#allocation3 + $0x20] sm:$0xff] %vm577_vm6, %v562_v56 }
  0xe5   : > { %v519_v57 = vpop.permute.xlu1 %518 }
  0xe6   : > { %v566_v58 = vpop.permute.xlu0 %565  ;;  %536 = vst.msk [vmem:[#allocation3 + $0x38] sm:$0xff] %vm528_vm5, %v519_v57 }
  0xe7   : > { %584 = vst.msk [vmem:[#allocation3 + $0x30] sm:$0xff] %vm577_vm6, %v566_v58 }
  0xe9   : > { %v564_v59 = vpop.permute.xlu1 %563 }
  0xea   : > { %v611_v60 = vpop.permute.xlu0 %610  ;;  %583 = vst.msk [vmem:[#allocation3 + $0x28] sm:$0xff] %vm577_vm6, %v564_v59 }
  0xeb   : > { %631 = vst.msk [vmem:[#allocation3 + $0x20] sm:$0xff] %vm626_vm7, %v611_v60 }
  0xed   : > { %v568_v61 = vpop.permute.xlu1 %567 }
  0xee   : > { %v615_v62 = vpop.permute.xlu0 %614  ;;  %585 = vst.msk [vmem:[#allocation3 + $0x38] sm:$0xff] %vm577_vm6, %v568_v61 }
  0xef   : > { %633 = vst.msk [vmem:[#allocation3 + $0x30] sm:$0xff] %vm626_vm7, %v615_v62 }
  0xf1   : > { %v613_v63 = vpop.permute.xlu1 %612 }
  0xf2   : > { %v661_v0 = vpop.permute.xlu0 %660  ;;  %632 = vst.msk [vmem:[#allocation3 + $0x28] sm:$0xff] %vm626_vm7, %v613_v63 }
  0xf3   : > { %681 = vst.msk [vmem:[#allocation3 + $0x20] sm:$0xff] %vm676_vm8, %v661_v0 }
  0xf5   : > { %v617_v1 = vpop.permute.xlu1 %616 }
  0xf6   : > { %v665_v2 = vpop.permute.xlu0 %664  ;;  %634 = vst.msk [vmem:[#allocation3 + $0x38] sm:$0xff] %vm626_vm7, %v617_v1 }
  0xf7   : > { %683 = vst.msk [vmem:[#allocation3 + $0x30] sm:$0xff] %vm676_vm8, %v665_v2 }
  0xf9   : > { %v663_v3 = vpop.permute.xlu1 %662 }
  0xfa   : > { %v710_v4 = vpop.permute.xlu0 %709  ;;  %682 = vst.msk [vmem:[#allocation3 + $0x28] sm:$0xff] %vm676_vm8, %v663_v3 }
  0xfb   : > { %730 = vst.msk [vmem:[#allocation3 + $0x20] sm:$0xff] %vm725_vm9, %v710_v4 }
  0xfd   : > { %v667_v5 = vpop.permute.xlu1 %666 }
  0xfe   : > { %v714_v6 = vpop.permute.xlu0 %713  ;;  %684 = vst.msk [vmem:[#allocation3 + $0x38] sm:$0xff] %vm676_vm8, %v667_v5 }
  0xff   : > { %732 = vst.msk [vmem:[#allocation3 + $0x30] sm:$0xff] %vm725_vm9, %v714_v6 }
 0x101   : > { %v712_v7 = vpop.permute.xlu1 %711 }
 0x102   : > { %v759_v8 = vpop.permute.xlu0 %758  ;;  %731 = vst.msk [vmem:[#allocation3 + $0x28] sm:$0xff] %vm725_vm9, %v712_v7 }
 0x103   : > { %779 = vst.msk [vmem:[#allocation3 + $0x20] sm:$0xff] %vm774_vm10, %v759_v8 }
 0x105   : > { %v716_v9 = vpop.permute.xlu1 %715 }
 0x106   : > { %v763_v10 = vpop.permute.xlu0 %762  ;;  %733 = vst.msk [vmem:[#allocation3 + $0x38] sm:$0xff] %vm725_vm9, %v716_v9 }
 0x107   : > { %781 = vst.msk [vmem:[#allocation3 + $0x30] sm:$0xff] %vm774_vm10, %v763_v10 }
 0x109   : > { %v761_v11 = vpop.permute.xlu1 %760 }
 0x10a   : > { %780 = vst.msk [vmem:[#allocation3 + $0x28] sm:$0xff] %vm774_vm10, %v761_v11  ;;  %v787_v13 = vld [vmem:[#allocation3 + $0x20] sm:$0xff] }
 0x10d   : > { %v765_v12 = vpop.permute.xlu1 %764 }
 0x10e   : > { %782 = vst.msk [vmem:[#allocation3 + $0x38] sm:$0xff] %vm774_vm10, %v765_v12  ;;  %v789_v16 = vld [vmem:[#allocation3 + $0x30] sm:$0xff] }
 0x111   : > { %v788_v14 = vld [vmem:[#allocation3 + $0x28] sm:$0xff] }
 0x112   : > { %v793_v15 = vpack.c.bf16 %v788_v14, %v787_v13 }
 0x114   : > { %1143 = vmatprep.mubr.msk.bf16.mxu1 %vm838_vm11, %v793_v15 }
 0x115   : > { %v790_v17 = vld [vmem:[#allocation3 + $0x38] sm:$0xff] }
 0x116   : > { %v794_v18 = vpack.c.bf16 %v790_v17, %v789_v16 }
 0x118   : > { %1144 = vmatmul.mubr.msk.bf16.vlgmr.msra.gmra.mrb[0].mxu1 %vm838_vm11, %v794_v18 }
 0x1af   : > { %v1141_v20 = vpop.f32.mrb[0].mxu0 }
 0x1b0   : > { %v898_v21 = vadd.f32 %v1141_v20, %v1106_v19  ;;  %v889_v22 = vpop.f32.mrb[1].mxu0 }
 0x1b1   : > { %v890_v23 = vadd.f32 %v1106_v19, %v889_v22  ;;  %v1142_v24 = vpop.f32.mrb[2].mxu0 }
 0x1b2   : > { %922 = vst.msk [vmem:[%s1472_s14 + $0x10] sm:$0xff] %vm343_vm0, %v898_v21  ;;  %v901_v25 = vadd.f32 %v1142_v24, %v1106_v19  ;;  %v892_v26 = vpop.f32.mrb[3].mxu0  ;;  %v931_v31 = vsel %vm343_vm0, %v898_v21, 0.0 }
 0x1b3   : > { %920 = vst.msk [vmem:[%s1472_s14] sm:$0xff] %vm343_vm0, %v890_v23  ;;  %v893_v27 = vadd.f32 %v1106_v19, %v892_v26  ;;  %v928_v29 = vsel %vm343_vm0, %v890_v23, 0.0 }
 0x1b4   : > { %923 = vst.msk [vmem:[%s1472_s14 + $0x18] sm:$0xff] %vm343_vm0, %v901_v25  ;;  %v933_v36 = vsel %vm343_vm0, %v901_v25, 0.0 }
 0x1b5   : > { %921 = vst.msk [vmem:[%s1472_s14 + $0x8] sm:$0xff] %vm343_vm0, %v893_v27  ;;  %v929_v28 = vsel %vm343_vm0, %v893_v27, 0.0 }
 0x1b6   : > { %v930_v30 = vadd.f32 %v929_v28, %v928_v29 }
 0x1b8   : > { %v932_v32 = vadd.f32 %v931_v31, %v930_v30 }
 0x1ba   : > { %v934_v39 = vadd.f32 %v933_v36, %v932_v32 }
 0x1eb   : > { %v1145_v33 = vpop.f32.mrb[0].mxu1 }
 0x1ec   : > { %v914_v34 = vadd.f32 %v1145_v33, %v1106_v19  ;;  %v905_v35 = vpop.f32.mrb[1].mxu1 }
 0x1ed   : > { %v906_v37 = vadd.f32 %v1106_v19, %v905_v35  ;;  %v1146_v38 = vpop.f32.mrb[2].mxu1 }
 0x1ee   : > { %926 = vst.msk [vmem:[%s1472_s14 + $0x30] sm:$0xff] %vm343_vm0, %v914_v34  ;;  %v917_v40 = vadd.f32 %v1146_v38, %v1106_v19  ;;  %v908_v41 = vpop.f32.mrb[3].mxu1  ;;  %v939_v47 = vsel %vm343_vm0, %v914_v34, 0.0 }
 0x1ef   : > { %924 = vst.msk [vmem:[%s1472_s14 + $0x20] sm:$0xff] %vm343_vm0, %v906_v37  ;;  %v935_v42 = vsel %vm343_vm0, %v906_v37, 0.0  ;;  %v909_v43 = vadd.f32 %v1106_v19, %v908_v41 }
 0x1f0   : > { %v936_v44 = vadd.f32 %v935_v42, %v934_v39  ;;  %927 = vst.msk [vmem:[%s1472_s14 + $0x38] sm:$0xff] %vm343_vm0, %v917_v40  ;;  %v941_v49 = vsel %vm343_vm0, %v917_v40, 0.0 }
 0x1f1   : > { %925 = vst.msk [vmem:[%s1472_s14 + $0x28] sm:$0xff] %vm343_vm0, %v909_v43  ;;  %v937_v45 = vsel %vm343_vm0, %v909_v43, 0.0 }
 0x1f2   : > { %v938_v46 = vadd.f32 %v937_v45, %v936_v44 }
 0x1f4   : > { %v940_v48 = vadd.f32 %v939_v47, %v938_v46 }
 0x1f6   : > { %v942_v50 = vadd.f32 %v941_v49, %v940_v48 }
 0x1f8   : > { %v943_v51 = vrot.slane %v942_v50, 4 }
 0x1fa   : > { %v944_v52 = vadd.f32 %v943_v51, %v942_v50 }
 0x1fc   : > { %v945_v53 = vrot.slane %v944_v52, 2 }
 0x1fe   : > { %v946_v54 = vadd.f32 %v945_v53, %v944_v52 }
 0x200   : > { %v947_v55 = vrot.slane %v946_v54, 1 }
 0x202   : > { %v948_v56 = vadd.f32 %v947_v55, %v946_v54 }
 0x204   : > { %v949_v57 = vmul.f32 0.015625, %v948_v56 }
 0x206   : > { %v950_v58 = vsub.f32 %v890_v23, %v949_v57  ;;  %v951_v59 = vsub.f32 %v893_v27, %v949_v57  ;;  %v952_v60 = vsub.f32 %v898_v21, %v949_v57  ;;  %v953_v61 = vsub.f32 %v901_v25, %v949_v57  ;;  %988 = vst.msk [vmem:[%s292_s16] sm:$0x1] %vm987_vm12, %v949_v57 }
 0x207   : > { %v954_v62 = vsub.f32 %v906_v37, %v949_v57  ;;  %v955_v63 = vsub.f32 %v909_v43, %v949_v57  ;;  %v956_v0 = vsub.f32 %v914_v34, %v949_v57  ;;  %v957_v1 = vsub.f32 %v917_v40, %v949_v57 }
 0x208   : > { %v958_v2 = vmul.f32 %v950_v58, %v950_v58  ;;  %v959_v3 = vmul.f32 %v951_v59, %v951_v59  ;;  %v960_v4 = vmul.f32 %v952_v60, %v952_v60  ;;  %v961_v5 = vmul.f32 %v953_v61, %v953_v61 }
 0x209   : > { %v962_v9 = vmul.f32 %v954_v62, %v954_v62  ;;  %v963_v12 = vmul.f32 %v955_v63, %v955_v63  ;;  %v964_v15 = vmul.f32 %v956_v0, %v956_v0  ;;  %v965_v18 = vmul.f32 %v957_v1, %v957_v1 }
 0x20a   : > { %v966_v6 = vsel %vm343_vm0, %v958_v2, 0.0  ;;  %v967_v7 = vsel %vm343_vm0, %v959_v3, 0.0  ;;  %v969_v10 = vsel %vm343_vm0, %v960_v4, 0.0  ;;  %v971_v13 = vsel %vm343_vm0, %v961_v5, 0.0 }
 0x20b   : > { %v968_v8 = vadd.f32 %v967_v7, %v966_v6  ;;  %v973_v16 = vsel %vm343_vm0, %v962_v9, 0.0  ;;  %v975_v19 = vsel %vm343_vm0, %v963_v12, 0.0  ;;  %v977_v21 = vsel %vm343_vm0, %v964_v15, 0.0 }
 0x20c   : > { %v979_v23 = vsel %vm343_vm0, %v965_v18, 0.0 }
 0x20d   : > { %v970_v11 = vadd.f32 %v969_v10, %v968_v8 }
 0x20f   : > { %v972_v14 = vadd.f32 %v971_v13, %v970_v11 }
 0x211   : > { %v974_v17 = vadd.f32 %v973_v16, %v972_v14 }
 0x213   : > { %v976_v20 = vadd.f32 %v975_v19, %v974_v17 }
 0x215   : > { %v978_v22 = vadd.f32 %v977_v21, %v976_v20 }
 0x217   : > { %v980_v24 = vadd.f32 %v979_v23, %v978_v22 }
 0x219   : > { %v981_v25 = vrot.slane %v980_v24, 4 }
 0x21b   : > { %v982_v26 = vadd.f32 %v981_v25, %v980_v24 }
 0x21d   : > { %v983_v27 = vrot.slane %v982_v26, 2 }
 0x21f   : > { %v984_v28 = vadd.f32 %v983_v27, %v982_v26 }
 0x221   : > { %v985_v29 = vrot.slane %v984_v28, 1 }
 0x223   : > { %v986_v30 = vadd.f32 %v985_v29, %v984_v28 }
 0x225   : > { %989 = vst.msk [vmem:[%s295_s19] sm:$0x1] %vm987_vm12, %v986_v30 }
 0x226 PF: > { %s18_s24 = sadd.s32 1, %s1187_s24  }
 0x227   : > { %p15_p4 = scmp.ge.s32.totalorder %s18_s24, 4  }
 0x229   :  { %17 = sbr.rel (!%p15_p4) target bundleno = 1 (0x1), region = 96 }

// kernel: down_forward.3
= control target key start
LH: loop header
LB: loop body
LE: loop exit
PB: predicated region body
PF: predicated region fallthrough
CT: control target
= control target key end

     0   :  { %s1163_s18 = smov 0   ;;  %s1435_s0 = inlined_call_operand.vmem [shape: f32[2,8,2,8,8], index: 0, kind: input, shape index: {}]   ;;  %s1436_s1 = inlined_call_operand.vmem [shape: bf16[36,8], index: 1, kind: input, shape index: {}]   ;;  %s1437_s2 = inlined_call_operand.vmem [shape: f32[1,8], index: 2, kind: input, shape index: {}]   ;;  %s1438_s3 = inlined_call_operand.vmem [shape: f32[2,64,8], index: 3, kind: output, shape index: {0}]   ;;  %s1439_s4 = inlined_call_operand.vmem [shape: f32[2,1,8], index: 4, kind: output, shape index: {1}]   ;;  %s1440_s5 = inlined_call_operand.vmem [shape: f32[2,1,8], index: 5, kind: output, shape index: {2}]  }
   0x1 LB: > { %s1044_s19 = sadd.s32 4294967295, %s1121_s18   ;;  %p1048_p0 = scmp.ge.s32.totalorder %s1121_s18, 1  ;;  %s1121_s18 = sphi %s1163_s18, %s16_s18  }
   0x2   : > { %p192_p1 = scmp.lt.s32.totalorder %s1121_s18, 3 }
   0x4   : > { %p193_p2 = pnand %p1048_p0, %p192_p1 }
   0x5   : > { %p1171_p3 = scmp.lt.s32.totalorder (!%p193_p2), %s1044_s19, 1  ;;  %vm307_vm0 = vcmask (!%p193_p2), 31744   ;;  %vm309_vm1 = vcmask (!%p193_p2), 25600   ;;  %v1123_v0 = vmov (!%p193_p2), 0.0   ;;  %s1124_s25 = smov (!%p193_p2), 124   ;;  %vm394_vm2 = vcmask (!%p193_p2), 64544  }
   0x6   : > { %196 = sbr.rel (%p193_p2) target bundleno = 659 (0x293), region = 32  ;;  %311 = vst.msk [vmem:[#allocation2 + $0x10] sm:$0xff] (!%p193_p2), %vm307_vm0, %v1123_v0  ;;  %308 = vst.msk [vmem:[#allocation2] sm:$0xff] (!%p193_p2), %vm307_vm0, %v1123_v0  ;;  %s1125_s26 = smov (!%p193_p2), 4   ;;  %vm443_vm3 = vcmask (!%p193_p2), 97344   ;;  %v1112_v63 = vld [vmem:[%s1436_s1] sm:$0xff] (!%p193_p2)  }
   0x7   : > { %312 = vst.msk [vmem:[#allocation2 + $0x18] sm:$0x3] (!%p193_p2), %vm309_vm1, %v1123_v0  ;;  %310 = vst.msk [vmem:[#allocation2 + $0x8] sm:$0x3] (!%p193_p2), %vm309_vm1, %v1123_v0  ;;  %s1126_s27 = smov (!%p193_p2), 24   ;;  %s1127_s28 = smov (!%p193_p2), 8   ;;  %1072 = vmatprep.subr.bf16.mxu0 (!%p193_p2), %v1112_v63  ;;  %1086 = vmatprep.subr.bf16.mxu1 (!%p193_p2), %v1112_v63 }
   0x8   : > { %313 = vst.msk [vmem:[#allocation2 + $0x20] sm:$0xff] (!%p193_p2), %vm307_vm0, %v1123_v0  ;;  %315 = vst.msk [vmem:[#allocation2 + $0x30] sm:$0xff] (!%p193_p2), %vm307_vm0, %v1123_v0  ;;  %s1128_s29 = smov (!%p193_p2), 28   ;;  %s1129_s30 = smov (!%p193_p2), 12   ;;  %1073 = vmatpush3.bf16.msra.mxu0 (!%p193_p2), %v1112_v63  ;;  %1089 = vmatpush3.bf16.msra.mxu1 (!%p193_p2), %v1112_v63  ;;  %vm799_vm4 = vcmask (!%p193_p2), 1041408   ;;  %vm492_vm5 = vcmask (!%p193_p2), 130144  }
   0x9   : > { %314 = vst.msk [vmem:[#allocation2 + $0x28] sm:$0x3] (!%p193_p2), %vm309_vm1, %v1123_v0  ;;  %316 = vst.msk [vmem:[#allocation2 + $0x38] sm:$0x3] (!%p193_p2), %vm309_vm1, %v1123_v0  ;;  %s1130_s6 = smov (!%p193_p2), 16   ;;  %s1131_s7 = smov (!%p193_p2), 20  }
   0xa   : > { %317 = vst.msk [vmem:[#allocation2 + $0x40] sm:$0xff] (!%p193_p2), %vm307_vm0, %v1123_v0  ;;  %319 = vst.msk [vmem:[#allocation2 + $0x50] sm:$0xff] (!%p193_p2), %vm307_vm0, %v1123_v0  ;;  %s1132_s12 = smov (!%p193_p2), 32   ;;  %vm541_vm6 = vcmask (!%p193_p2), 162944   ;;  %vm590_vm7 = vcmask (!%p193_p2), 195744   ;;  %vm640_vm8 = vcmask (!%p193_p2), 228544  }
   0xb   : > { %318 = vst.msk [vmem:[#allocation2 + $0x48] sm:$0x3] (!%p193_p2), %vm309_vm1, %v1123_v0  ;;  %320 = vst.msk [vmem:[#allocation2 + $0x58] sm:$0x3] (!%p193_p2), %vm309_vm1, %v1123_v0  ;;  %vm689_vm9 = vcmask (!%p193_p2), 261344   ;;  %vm738_vm10 = vcmask (!%p193_p2), 294144  }
   0xc   : > { %321 = vst.msk [vmem:[#allocation2 + $0x60] sm:$0xff] (!%p193_p2), %vm307_vm0, %v1123_v0  ;;  %323 = vst.msk [vmem:[#allocation2 + $0x70] sm:$0xff] (!%p193_p2), %vm307_vm0, %v1123_v0  ;;  %vm786_vm11 = vcmask (!%p193_p2), 293888   ;;  %vm868_vm12 = vcmask (!%p193_p2), 64512   ;;  %vm936_vm13 = vcmask (!%p193_p2), 57344  }
   0xd   : > { %322 = vst.msk [vmem:[#allocation2 + $0x68] sm:$0x3] %vm309_vm1, %v1123_v0  ;;  %324 = vst.msk [vmem:[#allocation2 + $0x78] sm:$0x3] %vm309_vm1, %v1123_v0  ;;  %s1443_s19 = smov (!%p1171_p3, %s1044_s19), 1  ;;  %v338_v29 = vld [vmem:[#allocation2] sm:$0xff] }
   0xe   : > { %325 = vst.msk [vmem:[#allocation2 + $0x80] sm:$0xff] %vm307_vm0, %v1123_v0  ;;  %327 = vst.msk [vmem:[#allocation2 + $0x90] sm:$0xff] %vm307_vm0, %v1123_v0  ;;  %s1063_s21 = sshll.u32 %s1443_s19, 7  ;;  %v354_v25 = vld [vmem:[#allocation2 + $0x1] sm:$0xff]  ;;  %s1064_s15 = sshll.u32 %s1443_s19, 6 }
   0xf   : > { %326 = vst.msk [vmem:[#allocation2 + $0x88] sm:$0x3] %vm309_vm1, %v1123_v0  ;;  %328 = vst.msk [vmem:[#allocation2 + $0x98] sm:$0x3] %vm309_vm1, %v1123_v0  ;;  %s230_s24 = scalar_lea.vmem %s1435_s0, %s1063_s21  ;;  %v403_v27 = vld [vmem:[#allocation2 + $0x2] sm:$0xff]  ;;  %s1388_s22 = scalar_lea.vmem %s1438_s3, %s1064_s15 }
  0x10   : > { %v243_v1 = vld [vmem:[%s230_s24] sm:$0xff]  ;;  %v244_v2 = vld [vmem:[%s230_s24 + $0x8] sm:$0xff]  ;;  %v245_v6 = vld [vmem:[%s230_s24 + $0x10] sm:$0xff]  ;;  %346 = vst.msk [vmem:[#allocation3] sm:$0xff] %vm307_vm0, %v338_v29 }
  0x11   : > { %v247_v3 = vld [vmem:[%s230_s24 + $0x20] sm:$0xff]  ;;  %v259_v4 = vmax.f32 %v243_v1, %v244_v2  ;;  %v248_v5 = vld [vmem:[%s230_s24 + $0x28] sm:$0xff]  ;;  %v246_v7 = vld [vmem:[%s230_s24 + $0x18] sm:$0xff] }
  0x12   : > { %v261_v8 = vmax.f32 %v247_v3, %v248_v5  ;;  %v249_v9 = vld [vmem:[%s230_s24 + $0x30] sm:$0xff]  ;;  %v250_v10 = vld [vmem:[%s230_s24 + $0x38] sm:$0xff]  ;;  %v260_v11 = vmax.f32 %v245_v6, %v246_v7  ;;  %v251_v13 = vld [vmem:[%s230_s24 + $0x40] sm:$0xff] }
  0x13   : > { %275 = vrot.lane.b32.xlu0 %v259_v4, %s1124_s25  ;;  %v262_v12 = vmax.f32 %v249_v9, %v250_v10  ;;  %v252_v14 = vld [vmem:[%s230_s24 + $0x48] sm:$0xff]  ;;  %v253_v15 = vld [vmem:[%s230_s24 + $0x50] sm:$0xff]  ;;  %v254_v16 = vld [vmem:[%s230_s24 + $0x58] sm:$0xff] }
  0x14   : > { %279 = vrot.lane.b32.xlu1 %v261_v8, %s1124_s25  ;;  %v263_v17 = vmax.f32 %v251_v13, %v252_v14  ;;  %v264_v18 = vmax.f32 %v253_v15, %v254_v16  ;;  %v255_v19 = vld [vmem:[%s230_s24 + $0x60] sm:$0xff]  ;;  %v256_v20 = vld [vmem:[%s230_s24 + $0x68] sm:$0xff]  ;;  %v257_v21 = vld [vmem:[%s230_s24 + $0x70] sm:$0xff] }
  0x15   : > { %v258_v22 = vld [vmem:[%s230_s24 + $0x78] sm:$0xff]  ;;  %v265_v23 = vmax.f32 %v255_v19, %v256_v20  ;;  %v607_v26 = vld [vmem:[#allocation2 + $0x90] sm:$0xff]  ;;  %v1113_v1 = vld [vmem:[%s1436_s1 + $0x8] sm:$0xff]  }
  0x16   : > { %v266_v24 = vmax.f32 %v257_v21, %v258_v22  ;;  %v656_v28 = vld [vmem:[#allocation2 + $0x91] sm:$0xff]  ;;  %1074 = vmatprep.subr.bf16.mxu0 %v1113_v1  ;;  %1087 = vmatprep.subr.bf16.mxu1 %v1113_v1  ;;  %v1114_v2 = vld [vmem:[%s1436_s1 + $0x10] ss:$0 sps:$4 sm:$0x33]  }
  0x17   : > { %277 = vrot.lane.b32.xlu0 %v260_v11, %s1124_s25  ;;  %1075 = vmatpush3.bf16.msra.mxu0 %v1113_v1  ;;  %v801_v3 = vsel %vm799_vm4, %v1114_v2, 0  ;;  %v705_v14 = vld [vmem:[#allocation2 + $0x92] sm:$0xff] }
  0x18   : > { %281 = vrot.lane.b32.xlu1 %v262_v12, %s1124_s25  ;;  %1090 = vmatpush3.bf16.msra.mxu1 %v1113_v1 }
  0x19   : > { %1092 = vmatprep.subr.msk.bf16.mxu0 %vm799_vm4, %v1114_v2  ;;  %1093 = vmatprep.subr.msk.bf16.mxu1 %vm799_vm4, %v1114_v2 }
  0x1b   : > { %283 = vrot.lane.b32.xlu0 %v263_v17, %s1124_s25  ;;  %1077 = vmatpush3.bf16.msra.mxu0 %v801_v3 }
  0x1c   : > { %285 = vrot.lane.b32.xlu1 %v264_v18, %s1124_s25  ;;  %1091 = vmatpush3.bf16.msra.mxu1 %v801_v3 }
  0x1f   : > { %287 = vrot.lane.b32.xlu0 %v265_v23, %s1124_s25 }
  0x20   : > { %289 = vrot.lane.b32.xlu1 %v266_v24, %s1124_s25  ;;  %s238_s25 = scalar_lea.vmem %s1439_s4, %s1443_s19 }
  0x23   : > { %370 = vrot.lane.b32.xlu0 %v354_v25, %s1125_s26 }
  0x24   : > { %630 = vrot.lane.b32.xlu1 %v607_v26, %s1126_s27 }
  0x27   : > { %419 = vrot.lane.b32.xlu0 %v403_v27, %s1127_s28 }
  0x28   : > { %679 = vrot.lane.b32.xlu1 %v656_v28, %s1128_s29 }
  0x85   : > { %v276_v30 = vpop.permute.xlu0 %275 }
  0x86   : > { %v299_v31 = vmax.f32 %v259_v4, %v276_v30  ;;  %v280_v32 = vpop.permute.xlu1 %279 }
  0x87   : > { %v301_v33 = vmax.f32 %v261_v8, %v280_v32 }
  0x88   : > { %330 = vst.msk [vmem:[#allocation2 + $0x11] sm:$0xff] %vm307_vm0, %v299_v31 }
  0x89   : > { %332 = vst.msk [vmem:[#allocation2 + $0x31] sm:$0xff] %vm307_vm0, %v301_v33  ;;  %v278_v34 = vpop.permute.xlu0 %277 }
  0x8a   : > { %v300_v35 = vmax.f32 %v260_v11, %v278_v34  ;;  %v282_v36 = vpop.permute.xlu1 %281 }
  0x8b   : > { %v302_v37 = vmax.f32 %v262_v12, %v282_v36 }
  0x8c   : > { %331 = vst.msk [vmem:[#allocation2 + $0x21] sm:$0xff] %vm307_vm0, %v300_v35 }
  0x8d   : > { %333 = vst.msk [vmem:[#allocation2 + $0x41] sm:$0xff] %vm307_vm0, %v302_v37  ;;  %v284_v38 = vpop.permute.xlu0 %283 }
  0x8e   : > { %v303_v39 = vmax.f32 %v263_v17, %v284_v38  ;;  %v286_v40 = vpop.permute.xlu1 %285 }
  0x8f   : > { %v355_v41 = vld [vmem:[#allocation2 + $0x11] sm:$0xff]  ;;  %v304_v43 = vmax.f32 %v264_v18, %v286_v40 }
  0x90   : > { %v452_v42 = vld [vmem:[#allocation2 + $0x10] sm:$0xff]  ;;  %372 = vrot.lane.b32.xlu1 %v355_v41, %s1125_s26  ;;  %334 = vst.msk [vmem:[#allocation2 + $0x51] sm:$0xff] %vm307_vm0, %v303_v39 }
  0x91   : > { %v454_v44 = vld [vmem:[#allocation2 + $0x30] sm:$0xff]  ;;  %347 = vst.msk [vmem:[#allocation3 + $0x8] sm:$0xff] %vm307_vm0, %v452_v42  ;;  %335 = vst.msk [vmem:[#allocation2 + $0x61] sm:$0xff] %vm307_vm0, %v304_v43  ;;  %v288_v46 = vpop.permute.xlu0 %287 }
  0x92   : > { %v357_v45 = vld [vmem:[#allocation2 + $0x31] sm:$0xff]  ;;  %349 = vst.msk [vmem:[#allocation3 + $0x18] sm:$0xff] %vm307_vm0, %v454_v44  ;;  %v305_v47 = vmax.f32 %v265_v23, %v288_v46  ;;  %v290_v48 = vpop.permute.xlu1 %289 }
  0x93   : > { %v356_v49 = vld [vmem:[#allocation2 + $0x21] sm:$0xff]  ;;  %v306_v51 = vmax.f32 %v266_v24, %v290_v48  ;;  %v404_v54 = vld [vmem:[#allocation2 + $0x12] sm:$0xff] }
  0x94   : > { %v453_v50 = vld [vmem:[#allocation2 + $0x20] sm:$0xff]  ;;  %376 = vrot.lane.b32.xlu1 %v357_v45, %s1125_s26  ;;  %374 = vrot.lane.b32.xlu0 %v356_v49, %s1125_s26  ;;  %336 = vst.msk [vmem:[#allocation2 + $0x71] sm:$0xff] %vm307_vm0, %v305_v47  ;;  %v406_v59 = vld [vmem:[#allocation2 + $0x32] sm:$0xff] }
  0x95   : > { %v455_v52 = vld [vmem:[#allocation2 + $0x40] sm:$0xff]  ;;  %348 = vst.msk [vmem:[#allocation3 + $0x10] sm:$0xff] %vm307_vm0, %v453_v50  ;;  %337 = vst.msk [vmem:[#allocation2 + $0x81] sm:$0xff] %vm307_vm0, %v306_v51  ;;  %v371_v53 = vpop.permute.xlu0 %370 }
  0x96   : > { %350 = vst.msk [vmem:[#allocation3 + $0x20] sm:$0xff] %vm307_vm0, %v455_v52  ;;  %v405_v55 = vld [vmem:[#allocation2 + $0x22] sm:$0xff]  ;;  %v1299_v12 = vpop.permute.xlu1 %630 }
  0x97   : > { %395 = vst.msk [vmem:[#allocation3] sm:$0xff] %vm394_vm2, %v371_v53  ;;  %v1224_v56 = vld [vmem:[#allocation2 + $0x50] sm:$0xff]  ;;  %v504_v61 = vld [vmem:[#allocation2 + $0x41] sm:$0xff] }
  0x98   : > { %421 = vrot.lane.b32.xlu1 %v404_v54, %s1127_s28  ;;  %423 = vrot.lane.b32.xlu0 %v405_v55, %s1127_s28  ;;  %v1228_v57 = vld [vmem:[#allocation2 + $0x60] sm:$0xff]  ;;  %351 = vst.msk [vmem:[#allocation3 + $0x28] sm:$0xff] %vm307_vm0, %v1224_v56  ;;  %v652_v0 = vld [vmem:[#allocation2 + $0x51] sm:$0xff] }
  0x99   : > { %v420_v58 = vpop.permute.xlu0 %419  ;;  %352 = vst.msk [vmem:[#allocation3 + $0x30] sm:$0xff] %vm307_vm0, %v1228_v57  ;;  %v553_v62 = vld [vmem:[#allocation2 + $0x42] sm:$0xff]  ;;  %v701_v5 = vld [vmem:[#allocation2 + $0x52] sm:$0xff] }
  0x9a   : > { %444 = vst.msk [vmem:[#allocation3] sm:$0xff] %vm443_vm3, %v420_v58  ;;  %v360_v4 = vld [vmem:[#allocation2 + $0x61] sm:$0xff]  ;;  %v1306_v13 = vpop.permute.xlu1 %679 }
  0x9b   : > { %v1235_v60 = vld [vmem:[#allocation2 + $0x70] sm:$0xff]  ;;  %v409_v7 = vld [vmem:[#allocation2 + $0x62] sm:$0xff] }
  0x9c   : > { %425 = vrot.lane.b32.xlu1 %v406_v59, %s1127_s28  ;;  %468 = vrot.lane.b32.xlu0 %v452_v42, %s1129_s30  ;;  %353 = vst.msk [vmem:[#allocation3 + $0x38] sm:$0xff] %vm307_vm0, %v1235_v60  ;;  %v361_v6 = vld [vmem:[#allocation2 + $0x71] sm:$0xff]  ;;  %v459_v9 = vld [vmem:[#allocation2 + $0x80] sm:$0xff] }
  0x9d   : > { %v410_v8 = vld [vmem:[#allocation2 + $0x72] sm:$0xff]  ;;  %v508_v10 = vld [vmem:[#allocation2 + $0x81] sm:$0xff] }
  0x9e   : > { %v557_v11 = vld [vmem:[#allocation2 + $0x82] sm:$0xff] }
  0xa0   : > { %470 = vrot.lane.b32.xlu1 %v453_v50, %s1129_s30  ;;  %472 = vrot.lane.b32.xlu0 %v454_v44, %s1129_s30 }
  0xa4   : > { %474 = vrot.lane.b32.xlu1 %v455_v52, %s1129_s30  ;;  %517 = vrot.lane.b32.xlu0 %v355_v41, %s1130_s6 }
  0xa8   : > { %519 = vrot.lane.b32.xlu1 %v356_v49, %s1130_s6  ;;  %521 = vrot.lane.b32.xlu0 %v357_v45, %s1130_s6 }
  0xac   : > { %523 = vrot.lane.b32.xlu1 %v504_v61, %s1130_s6  ;;  %566 = vrot.lane.b32.xlu0 %v404_v54, %s1131_s7 }
  0xb0   : > { %568 = vrot.lane.b32.xlu1 %v405_v55, %s1131_s7  ;;  %570 = vrot.lane.b32.xlu0 %v406_v59, %s1131_s7 }
  0xb4   : > { %572 = vrot.lane.b32.xlu1 %v553_v62, %s1131_s7  ;;  %616 = vrot.lane.b32.xlu0 %v453_v50, %s1126_s27 }
  0xb8   : > { %618 = vrot.lane.b32.xlu1 %v454_v44, %s1126_s27  ;;  %620 = vrot.lane.b32.xlu0 %v455_v52, %s1126_s27 }
  0xbc   : > { %665 = vrot.lane.b32.xlu0 %v356_v49, %s1128_s29  ;;  %622 = vrot.lane.b32.xlu1 %v1224_v56, %s1126_s27 }
  0xc0   : > { %669 = vrot.lane.b32.xlu0 %v504_v61, %s1128_s29  ;;  %667 = vrot.lane.b32.xlu1 %v357_v45, %s1128_s29 }
  0xc4   : > { %714 = vrot.lane.b32.xlu0 %v405_v55, %s1132_s12  ;;  %671 = vrot.lane.b32.xlu1 %v652_v0, %s1128_s29 }
  0xc8   : > { %378 = vrot.lane.b32.xlu0 %v504_v61, %s1125_s26  ;;  %716 = vrot.lane.b32.xlu1 %v406_v59, %s1132_s12 }
  0xcc   : > { %718 = vrot.lane.b32.xlu0 %v553_v62, %s1132_s12  ;;  %380 = vrot.lane.b32.xlu1 %v652_v0, %s1125_s26 }
  0xd0   : > { %382 = vrot.lane.b32.xlu0 %v360_v4, %s1125_s26  ;;  %720 = vrot.lane.b32.xlu1 %v701_v5, %s1132_s12 }
  0xd4   : > { %427 = vrot.lane.b32.xlu0 %v553_v62, %s1127_s28  ;;  %384 = vrot.lane.b32.xlu1 %v361_v6, %s1125_s26 }
  0xd8   : > { %431 = vrot.lane.b32.xlu0 %v409_v7, %s1127_s28  ;;  %429 = vrot.lane.b32.xlu1 %v701_v5, %s1127_s28 }
  0xdc   : > { %476 = vrot.lane.b32.xlu0 %v1224_v56, %s1129_s30  ;;  %433 = vrot.lane.b32.xlu1 %v410_v8, %s1127_s28  ;;  %s241_s28 = scalar_lea.vmem %s1440_s5, %s1443_s19 }
  0xe0   : > { %480 = vrot.lane.b32.xlu0 %v1235_v60, %s1129_s30  ;;  %478 = vrot.lane.b32.xlu1 %v1228_v57, %s1129_s30 }
  0xe4   : > { %525 = vrot.lane.b32.xlu0 %v652_v0, %s1130_s6  ;;  %482 = vrot.lane.b32.xlu1 %v459_v9, %s1129_s30 }
  0xe8   : > { %529 = vrot.lane.b32.xlu0 %v361_v6, %s1130_s6  ;;  %527 = vrot.lane.b32.xlu1 %v360_v4, %s1130_s6 }
  0xec   : > { %574 = vrot.lane.b32.xlu0 %v701_v5, %s1131_s7  ;;  %531 = vrot.lane.b32.xlu1 %v508_v10, %s1130_s6 }
  0xf0   : > { %578 = vrot.lane.b32.xlu0 %v410_v8, %s1131_s7  ;;  %576 = vrot.lane.b32.xlu1 %v409_v7, %s1131_s7 }
  0xf4   : > { %624 = vrot.lane.b32.xlu0 %v1228_v57, %s1126_s27  ;;  %580 = vrot.lane.b32.xlu1 %v557_v11, %s1131_s7 }
  0xf8   : > { %628 = vrot.lane.b32.xlu0 %v459_v9, %s1126_s27  ;;  %626 = vrot.lane.b32.xlu1 %v1235_v60, %s1126_s27 }
  0xfc   : > { %673 = vrot.lane.b32.xlu0 %v360_v4, %s1128_s29  ;;  %675 = vrot.lane.b32.xlu1 %v361_v6, %s1128_s29 }
 0x100   : > { %677 = vrot.lane.b32.xlu0 %v508_v10, %s1128_s29  ;;  %724 = vrot.lane.b32.xlu1 %v410_v8, %s1132_s12 }
 0x102   : > { %v373_v15 = vpop.permute.xlu1 %372 }
 0x103   : > { %396 = vst.msk [vmem:[#allocation3 + $0x8] sm:$0xff] %vm394_vm2, %v373_v15 }
 0x104   : > { %722 = vrot.lane.b32.xlu0 %v409_v7, %s1132_s12  ;;  %728 = vrot.lane.b32.xlu1 %v705_v14, %s1132_s12 }
 0x106   : > { %v377_v16 = vpop.permute.xlu1 %376  ;;  %v375_v17 = vpop.permute.xlu0 %374 }
 0x107   : > { %398 = vst.msk [vmem:[#allocation3 + $0x18] sm:$0xff] %vm394_vm2, %v377_v16  ;;  %397 = vst.msk [vmem:[#allocation3 + $0x10] sm:$0xff] %vm394_vm2, %v375_v17 }
 0x108   : > { %726 = vrot.lane.b32.xlu0 %v557_v11, %s1132_s12 }
 0x10a   : > { %v422_v18 = vpop.permute.xlu1 %421  ;;  %v424_v19 = vpop.permute.xlu0 %423 }
 0x10b   : > { %445 = vst.msk [vmem:[#allocation3 + $0x8] sm:$0xff] %vm443_vm3, %v422_v18  ;;  %446 = vst.msk [vmem:[#allocation3 + $0x10] sm:$0xff] %vm443_vm3, %v424_v19 }
 0x10e   : > { %v426_v20 = vpop.permute.xlu1 %425  ;;  %v469_v21 = vpop.permute.xlu0 %468 }
 0x10f   : > { %447 = vst.msk [vmem:[#allocation3 + $0x18] sm:$0xff] %vm443_vm3, %v426_v20 }
 0x110   : > { %493 = vst.msk [vmem:[#allocation3] sm:$0xff] %vm492_vm5, %v469_v21 }
 0x112   : > { %v471_v22 = vpop.permute.xlu1 %470  ;;  %v473_v23 = vpop.permute.xlu0 %472 }
 0x113   : > { %494 = vst.msk [vmem:[#allocation3 + $0x8] sm:$0xff] %vm492_vm5, %v471_v22  ;;  %495 = vst.msk [vmem:[#allocation3 + $0x10] sm:$0xff] %vm492_vm5, %v473_v23  ;;  %v1053_v23 = vld [vmem:[%s1437_s2] ss:$0 sm:$0xff] }
 0x116   : > { %v475_v24 = vpop.permute.xlu1 %474  ;;  %v518_v25 = vpop.permute.xlu0 %517 }
 0x117   : > { %496 = vst.msk [vmem:[#allocation3 + $0x18] sm:$0xff] %vm492_vm5, %v475_v24 }
 0x118   : > { %542 = vst.msk [vmem:[#allocation3] sm:$0xff] %vm541_vm6, %v518_v25 }
 0x11a   : > { %v520_v26 = vpop.permute.xlu1 %519  ;;  %v522_v27 = vpop.permute.xlu0 %521 }
 0x11b   : > { %543 = vst.msk [vmem:[#allocation3 + $0x8] sm:$0xff] %vm541_vm6, %v520_v26  ;;  %544 = vst.msk [vmem:[#allocation3 + $0x10] sm:$0xff] %vm541_vm6, %v522_v27 }
 0x11e   : > { %v524_v28 = vpop.permute.xlu1 %523  ;;  %v567_v29 = vpop.permute.xlu0 %566 }
 0x11f   : > { %545 = vst.msk [vmem:[#allocation3 + $0x18] sm:$0xff] %vm541_vm6, %v524_v28 }
 0x120   : > { %591 = vst.msk [vmem:[#allocation3] sm:$0xff] %vm590_vm7, %v567_v29 }
 0x122   : > { %v569_v30 = vpop.permute.xlu1 %568  ;;  %v571_v31 = vpop.permute.xlu0 %570 }
 0x123   : > { %592 = vst.msk [vmem:[#allocation3 + $0x8] sm:$0xff] %vm590_vm7, %v569_v30  ;;  %593 = vst.msk [vmem:[#allocation3 + $0x10] sm:$0xff] %vm590_vm7, %v571_v31 }
 0x126   : > { %v573_v32 = vpop.permute.xlu1 %572  ;;  %v617_v33 = vpop.permute.xlu0 %616 }
 0x127   : > { %594 = vst.msk [vmem:[#allocation3 + $0x18] sm:$0xff] %vm590_vm7, %v573_v32 }
 0x128   : > { %641 = vst.msk [vmem:[#allocation3] sm:$0xff] %vm640_vm8, %v617_v33 }
 0x12a   : > { %v619_v34 = vpop.permute.xlu1 %618  ;;  %v621_v35 = vpop.permute.xlu0 %620 }
 0x12b   : > { %642 = vst.msk [vmem:[#allocation3 + $0x8] sm:$0xff] %vm640_vm8, %v619_v34  ;;  %643 = vst.msk [vmem:[#allocation3 + $0x10] sm:$0xff] %vm640_vm8, %v621_v35 }
 0x12e   : > { %v623_v36 = vpop.permute.xlu1 %622  ;;  %v666_v37 = vpop.permute.xlu0 %665 }
 0x12f   : > { %644 = vst.msk [vmem:[#allocation3 + $0x18] sm:$0xff] %vm640_vm8, %v623_v36 }
 0x130   : > { %690 = vst.msk [vmem:[#allocation3] sm:$0xff] %vm689_vm9, %v666_v37 }
 0x132   : > { %v668_v38 = vpop.permute.xlu1 %667  ;;  %v670_v39 = vpop.permute.xlu0 %669 }
 0x133   : > { %691 = vst.msk [vmem:[#allocation3 + $0x8] sm:$0xff] %vm689_vm9, %v668_v38  ;;  %692 = vst.msk [vmem:[#allocation3 + $0x10] sm:$0xff] %vm689_vm9, %v670_v39 }
 0x136   : > { %v672_v40 = vpop.permute.xlu1 %671  ;;  %v715_v41 = vpop.permute.xlu0 %714 }
 0x137   : > { %693 = vst.msk [vmem:[#allocation3 + $0x18] sm:$0xff] %vm689_vm9, %v672_v40 }
 0x138   : > { %739 = vst.msk [vmem:[#allocation3] sm:$0xff] %vm738_vm10, %v715_v41 }
 0x13a   : > { %v717_v42 = vpop.permute.xlu1 %716  ;;  %v379_v43 = vpop.permute.xlu0 %378 }
 0x13b   : > { %740 = vst.msk [vmem:[#allocation3 + $0x8] sm:$0xff] %vm738_vm10, %v717_v42 }
 0x13c   : > { %399 = vst.msk [vmem:[#allocation3 + $0x20] sm:$0xff] %vm394_vm2, %v379_v43 }
 0x13e   : > { %v381_v44 = vpop.permute.xlu1 %380  ;;  %v719_v45 = vpop.permute.xlu0 %718 }
 0x13f   : > { %400 = vst.msk [vmem:[#allocation3 + $0x28] sm:$0xff] %vm394_vm2, %v381_v44  ;;  %v747_v48 = vld [vmem:[#allocation3] sm:$0xff] }
 0x140   : > { %741 = vst.msk [vmem:[#allocation3 + $0x10] sm:$0xff] %vm738_vm10, %v719_v45 }
 0x142   : > { %v721_v46 = vpop.permute.xlu1 %720  ;;  %v383_v47 = vpop.permute.xlu0 %382  ;;  %v748_v49 = vld [vmem:[#allocation3 + $0x8] sm:$0xff] }
 0x143   : > { %742 = vst.msk [vmem:[#allocation3 + $0x18] sm:$0xff] %vm738_vm10, %v721_v46  ;;  %v755_v50 = vpack.c.bf16 %v748_v49, %v747_v48 }
 0x144   : > { %401 = vst.msk [vmem:[#allocation3 + $0x30] sm:$0xff] %vm394_vm2, %v383_v47 }
 0x145   : > { %1078 = vmatprep.mubr.msk.bf16.mxu0 %vm786_vm11, %v755_v50 }
 0x146   : > { %v385_v51 = vpop.permute.xlu1 %384  ;;  %v428_v52 = vpop.permute.xlu0 %427 }
 0x147   : > { %402 = vst.msk [vmem:[#allocation3 + $0x38] sm:$0xff] %vm394_vm2, %v385_v51  ;;  %v749_v55 = vld [vmem:[#allocation3 + $0x10] sm:$0xff] }
 0x148   : > { %448 = vst.msk [vmem:[#allocation3 + $0x20] sm:$0xff] %vm443_vm3, %v428_v52 }
 0x14a   : > { %v430_v53 = vpop.permute.xlu1 %429  ;;  %v432_v54 = vpop.permute.xlu0 %431  ;;  %v750_v56 = vld [vmem:[#allocation3 + $0x18] sm:$0xff] }
 0x14b   : > { %449 = vst.msk [vmem:[#allocation3 + $0x28] sm:$0xff] %vm443_vm3, %v430_v53  ;;  %450 = vst.msk [vmem:[#allocation3 + $0x30] sm:$0xff] %vm443_vm3, %v432_v54  ;;  %v756_v57 = vpack.c.bf16 %v750_v56, %v749_v55 }
 0x14d   : > { %1079 = vmatmul.mubr.msk.bf16.vlgmr.msra.gmra.mrb[0].mxu0 %vm786_vm11, %v756_v57 }
 0x14e   : > { %v434_v58 = vpop.permute.xlu1 %433  ;;  %v477_v59 = vpop.permute.xlu0 %476 }
 0x14f   : > { %451 = vst.msk [vmem:[#allocation3 + $0x38] sm:$0xff] %vm443_vm3, %v434_v58 }
 0x150   : > { %497 = vst.msk [vmem:[#allocation3 + $0x20] sm:$0xff] %vm492_vm5, %v477_v59 }
 0x152   : > { %v479_v60 = vpop.permute.xlu1 %478  ;;  %v481_v61 = vpop.permute.xlu0 %480 }
 0x153   : > { %498 = vst.msk [vmem:[#allocation3 + $0x28] sm:$0xff] %vm492_vm5, %v479_v60  ;;  %499 = vst.msk [vmem:[#allocation3 + $0x30] sm:$0xff] %vm492_vm5, %v481_v61 }
 0x156   : > { %v483_v62 = vpop.permute.xlu1 %482  ;;  %v526_v63 = vpop.permute.xlu0 %525 }
 0x157   : > { %500 = vst.msk [vmem:[#allocation3 + $0x38] sm:$0xff] %vm492_vm5, %v483_v62 }
 0x158   : > { %546 = vst.msk [vmem:[#allocation3 + $0x20] sm:$0xff] %vm541_vm6, %v526_v63 }
 0x15a   : > { %v528_v0 = vpop.permute.xlu1 %527  ;;  %v530_v1 = vpop.permute.xlu0 %529 }
 0x15b   : > { %547 = vst.msk [vmem:[#allocation3 + $0x28] sm:$0xff] %vm541_vm6, %v528_v0  ;;  %548 = vst.msk [vmem:[#allocation3 + $0x30] sm:$0xff] %vm541_vm6, %v530_v1 }
 0x15e   : > { %v532_v2 = vpop.permute.xlu1 %531  ;;  %v575_v3 = vpop.permute.xlu0 %574 }
 0x15f   : > { %549 = vst.msk [vmem:[#allocation3 + $0x38] sm:$0xff] %vm541_vm6, %v532_v2 }
 0x160   : > { %595 = vst.msk [vmem:[#allocation3 + $0x20] sm:$0xff] %vm590_vm7, %v575_v3 }
 0x162   : > { %v577_v4 = vpop.permute.xlu1 %576  ;;  %v579_v5 = vpop.permute.xlu0 %578 }
 0x163   : > { %596 = vst.msk [vmem:[#allocation3 + $0x28] sm:$0xff] %vm590_vm7, %v577_v4  ;;  %597 = vst.msk [vmem:[#allocation3 + $0x30] sm:$0xff] %vm590_vm7, %v579_v5 }
 0x166   : > { %v581_v6 = vpop.permute.xlu1 %580  ;;  %v625_v7 = vpop.permute.xlu0 %624 }
 0x167   : > { %598 = vst.msk [vmem:[#allocation3 + $0x38] sm:$0xff] %vm590_vm7, %v581_v6 }
 0x168   : > { %645 = vst.msk [vmem:[#allocation3 + $0x20] sm:$0xff] %vm640_vm8, %v625_v7  ;;  %648 = vst.msk [vmem:[#allocation3 + $0x38] sm:$0xff] %vm640_vm8, %v1299_v12 }
 0x169   : > { %697 = vst.msk [vmem:[#allocation3 + $0x38] sm:$0xff] %vm689_vm9, %v1306_v13 }
 0x16a   : > { %v627_v8 = vpop.permute.xlu1 %626  ;;  %v629_v9 = vpop.permute.xlu0 %628 }
 0x16b   : > { %646 = vst.msk [vmem:[#allocation3 + $0x28] sm:$0xff] %vm640_vm8, %v627_v8  ;;  %647 = vst.msk [vmem:[#allocation3 + $0x30] sm:$0xff] %vm640_vm8, %v629_v9 }
 0x16e   : > { %v676_v10 = vpop.permute.xlu1 %675  ;;  %v674_v11 = vpop.permute.xlu0 %673 }
 0x16f   : > { %695 = vst.msk [vmem:[#allocation3 + $0x28] sm:$0xff] %vm689_vm9, %v676_v10  ;;  %694 = vst.msk [vmem:[#allocation3 + $0x20] sm:$0xff] %vm689_vm9, %v674_v11 }
 0x172   : > { %v725_v14 = vpop.permute.xlu1 %724  ;;  %v678_v15 = vpop.permute.xlu0 %677 }
 0x173   : > { %744 = vst.msk [vmem:[#allocation3 + $0x28] sm:$0xff] %vm738_vm10, %v725_v14 }
 0x174   : > { %696 = vst.msk [vmem:[#allocation3 + $0x30] sm:$0xff] %vm689_vm9, %v678_v15 }
 0x176   : > { %v723_v12 = vpop.permute.xlu0 %722  ;;  %v729_v13 = vpop.permute.xlu1 %728 }
 0x177   : > { %743 = vst.msk [vmem:[#allocation3 + $0x20] sm:$0xff] %vm738_vm10, %v723_v12  ;;  %746 = vst.msk [vmem:[#allocation3 + $0x38] sm:$0xff] %vm738_vm10, %v729_v13 }
 0x17a   : > { %v727_v16 = vpop.permute.xlu0 %726  ;;  %v752_v18 = vld [vmem:[#allocation3 + $0x28] sm:$0xff] }
 0x17b   : > { %745 = vst.msk [vmem:[#allocation3 + $0x30] sm:$0xff] %vm738_vm10, %v727_v16 }
 0x17e   : > { %v751_v17 = vld [vmem:[#allocation3 + $0x20] sm:$0xff]  ;;  %v754_v20 = vld [vmem:[#allocation3 + $0x38] sm:$0xff] }
 0x17f   : > { %v757_v19 = vpack.c.bf16 %v752_v18, %v751_v17 }
 0x181   : > { %1082 = vmatprep.mubr.msk.bf16.mxu1 %vm786_vm11, %v757_v19 }
 0x182   : > { %v753_v21 = vld [vmem:[#allocation3 + $0x30] sm:$0xff] }
 0x183   : > { %v758_v22 = vpack.c.bf16 %v754_v20, %v753_v21 }
 0x185   : > { %1083 = vmatmul.mubr.msk.bf16.vlgmr.msra.gmra.mrb[0].mxu1 %vm786_vm11, %v758_v22 }
 0x220   : > { %v1080_v24 = vpop.f32.mrb[0].mxu0 }
 0x221   : > { %v846_v25 = vadd.f32 %v1080_v24, %v1053_v23  ;;  %v837_v26 = vpop.f32.mrb[1].mxu0 }
 0x222   : > { %v838_v27 = vadd.f32 %v1053_v23, %v837_v26  ;;  %v1081_v28 = vpop.f32.mrb[2].mxu0 }
 0x223   : > { %871 = vst.msk [vmem:[%s1388_s22 + $0x10] sm:$0xff] %vm868_vm12, %v846_v25  ;;  %v849_v29 = vadd.f32 %v1081_v28, %v1053_v23  ;;  %v840_v30 = vpop.f32.mrb[3].mxu0  ;;  %v880_v35 = vsel %vm868_vm12, %v846_v25, 0.0 }
 0x224   : > { %869 = vst.msk [vmem:[%s1388_s22] sm:$0xff] %vm868_vm12, %v838_v27  ;;  %v841_v31 = vadd.f32 %v1053_v23, %v840_v30  ;;  %v877_v33 = vsel %vm868_vm12, %v838_v27, 0.0 }
 0x225   : > { %872 = vst.msk [vmem:[%s1388_s22 + $0x18] sm:$0xff] %vm868_vm12, %v849_v29  ;;  %v882_v40 = vsel %vm868_vm12, %v849_v29, 0.0 }
 0x226   : > { %870 = vst.msk [vmem:[%s1388_s22 + $0x8] sm:$0xff] %vm868_vm12, %v841_v31  ;;  %v878_v32 = vsel %vm868_vm12, %v841_v31, 0.0 }
 0x227   : > { %v879_v34 = vadd.f32 %v878_v32, %v877_v33 }
 0x229   : > { %v881_v36 = vadd.f32 %v880_v35, %v879_v34 }
 0x22b   : > { %v883_v43 = vadd.f32 %v882_v40, %v881_v36 }
 0x258   : > { %v1084_v37 = vpop.f32.mrb[0].mxu1 }
 0x259   : > { %v862_v38 = vadd.f32 %v1084_v37, %v1053_v23  ;;  %v853_v39 = vpop.f32.mrb[1].mxu1 }
 0x25a   : > { %v854_v41 = vadd.f32 %v1053_v23, %v853_v39  ;;  %v1085_v42 = vpop.f32.mrb[2].mxu1 }
 0x25b   : > { %875 = vst.msk [vmem:[%s1388_s22 + $0x30] sm:$0xff] %vm868_vm12, %v862_v38  ;;  %v865_v44 = vadd.f32 %v1085_v42, %v1053_v23  ;;  %v856_v45 = vpop.f32.mrb[3].mxu1  ;;  %v888_v51 = vsel %vm868_vm12, %v862_v38, 0.0 }
 0x25c   : > { %873 = vst.msk [vmem:[%s1388_s22 + $0x20] sm:$0xff] %vm868_vm12, %v854_v41  ;;  %v884_v46 = vsel %vm868_vm12, %v854_v41, 0.0  ;;  %v857_v47 = vadd.f32 %v1053_v23, %v856_v45 }
 0x25d   : > { %v885_v48 = vadd.f32 %v884_v46, %v883_v43  ;;  %876 = vst.msk [vmem:[%s1388_s22 + $0x38] sm:$0xff] %vm868_vm12, %v865_v44  ;;  %v890_v53 = vsel %vm868_vm12, %v865_v44, 0.0 }
 0x25e   : > { %874 = vst.msk [vmem:[%s1388_s22 + $0x28] sm:$0xff] %vm868_vm12, %v857_v47  ;;  %v886_v49 = vsel %vm868_vm12, %v857_v47, 0.0 }
 0x25f   : > { %v887_v50 = vadd.f32 %v886_v49, %v885_v48 }
 0x261   : > { %v889_v52 = vadd.f32 %v888_v51, %v887_v50 }
 0x263   : > { %v891_v54 = vadd.f32 %v890_v53, %v889_v52 }
 0x265   : > { %v892_v55 = vrot.slane %v891_v54, 4 }
 0x267   : > { %v893_v56 = vadd.f32 %v892_v55, %v891_v54 }
 0x269   : > { %v894_v57 = vrot.slane %v893_v56, 2 }
 0x26b   : > { %v895_v58 = vadd.f32 %v894_v57, %v893_v56 }
 0x26d   : > { %v896_v59 = vrot.slane %v895_v58, 1 }
 0x26f   : > { %v897_v60 = vadd.f32 %v896_v59, %v895_v58 }
 0x271   : > { %v898_v61 = vmul.f32 0.015625, %v897_v60 }
 0x273   : > { %v899_v62 = vsub.f32 %v838_v27, %v898_v61  ;;  %v900_v63 = vsub.f32 %v841_v31, %v898_v61  ;;  %v901_v0 = vsub.f32 %v846_v25, %v898_v61  ;;  %v902_v1 = vsub.f32 %v849_v29, %v898_v61  ;;  %937 = vst.msk [vmem:[%s238_s25] sm:$0x1] %vm936_vm13, %v898_v61 }
 0x274   : > { %v903_v2 = vsub.f32 %v854_v41, %v898_v61  ;;  %v904_v3 = vsub.f32 %v857_v47, %v898_v61  ;;  %v905_v4 = vsub.f32 %v862_v38, %v898_v61  ;;  %v906_v5 = vsub.f32 %v865_v44, %v898_v61 }
 0x275   : > { %v907_v6 = vmul.f32 %v899_v62, %v899_v62  ;;  %v908_v7 = vmul.f32 %v900_v63, %v900_v63  ;;  %v909_v8 = vmul.f32 %v901_v0, %v901_v0  ;;  %v910_v9 = vmul.f32 %v902_v1, %v902_v1 }
 0x276   : > { %v911_v15 = vmul.f32 %v903_v2, %v903_v2  ;;  %v912_v16 = vmul.f32 %v904_v3, %v904_v3  ;;  %v913_v19 = vmul.f32 %v905_v4, %v905_v4  ;;  %v914_v22 = vmul.f32 %v906_v5, %v906_v5 }
 0x277   : > { %v915_v10 = vsel %vm868_vm12, %v907_v6, 0.0  ;;  %v916_v11 = vsel %vm868_vm12, %v908_v7, 0.0  ;;  %v918_v12 = vsel %vm868_vm12, %v909_v8, 0.0  ;;  %v920_v17 = vsel %vm868_vm12, %v910_v9, 0.0 }
 0x278   : > { %v917_v14 = vadd.f32 %v916_v11, %v915_v10  ;;  %v922_v20 = vsel %vm868_vm12, %v911_v15, 0.0  ;;  %v924_v23 = vsel %vm868_vm12, %v912_v16, 0.0  ;;  %v926_v25 = vsel %vm868_vm12, %v913_v19, 0.0 }
 0x279   : > { %v928_v27 = vsel %vm868_vm12, %v914_v22, 0.0 }
 0x27a   : > { %v919_v13 = vadd.f32 %v918_v12, %v917_v14 }
 0x27c   : > { %v921_v18 = vadd.f32 %v920_v17, %v919_v13 }
 0x27e   : > { %v923_v21 = vadd.f32 %v922_v20, %v921_v18 }
 0x280   : > { %v925_v24 = vadd.f32 %v924_v23, %v923_v21 }
 0x282   : > { %v927_v26 = vadd.f32 %v926_v25, %v925_v24 }
 0x284   : > { %v929_v28 = vadd.f32 %v928_v27, %v927_v26 }
 0x286   : > { %v930_v29 = vrot.slane %v929_v28, 4 }
 0x288   : > { %v931_v30 = vadd.f32 %v930_v29, %v929_v28 }
 0x28a   : > { %v932_v31 = vrot.slane %v931_v30, 2 }
 0x28c   : > { %v933_v32 = vadd.f32 %v932_v31, %v931_v30 }
 0x28e   : > { %v934_v33 = vrot.slane %v933_v32, 1 }
 0x290   : > { %v935_v34 = vadd.f32 %v934_v33, %v933_v32 }
 0x292   : > { %938 = vst.msk [vmem:[%s241_s28] sm:$0x1] %vm936_vm13, %v935_v34 }
 0x293 PF: > { %s16_s18 = sadd.s32 1, %s1121_s18  }
 0x294   : > { %p13_p4 = scmp.ge.s32.totalorder %s16_s18, 4  }
 0x296   :  { %15 = sbr.rel (!%p13_p4) target bundleno = 1 (0x1), region = 88 }

</bundles_post_ra>
